<compile_context>
chip_gen: v7x
topology: tpu7x:2x2x1
jax: 0.10.0
libtpu: 0.0.40
codegen_flags: <defaults>
</compile_context>

<pallas_src>
import functools
import numpy as np
import jax
import jax.numpy as jnp
from jax.experimental import pallas as pl
from jax.experimental.pallas import tpu as pltpu

LOG_2PI = float(np.log(2.0 * np.pi))


def _round_up(x, m):
    return ((x + m - 1) // m) * m


def _cdiv(a, b):
    return (a + b - 1) // b


def _pick_block(n, requested, chunk):
    """Block size: multiple of `chunk`, capped at problem size, and (when the
    problem is big enough) small enough for >=2 grid steps so both v7x
    TensorCores get work."""
    blk = _round_up(max(requested, chunk), chunk)
    blk = min(blk, _round_up(n, chunk))
    if n > 2 * chunk:
        blk = min(blk, _round_up(_cdiv(n, 2), chunk))
    return max(blk, chunk)


def _vmem_limit(per_step_bytes):
    # Explicit scoped-VMEM limit: generous headroom, but <= 48 MiB so it also
    # fits v7x's 64 MiB physical VMEM.
    return int(min(48 << 20, max(32 << 20, 4 * per_step_bytes)))


# ----------------------------------------------------------------------------
# Pallas kernel 1: full-rank MVN KL divergence (batch-on-lanes layout)
#   kl = 0.5 * ( tr(Pp^-1 Pf) + d^T Pp^-1 d + logdet(Pp) - logdet(Pf) - L )
# computed via A = Lp^-1 Lf (forward substitution, unrolled) and u = Lp^-1 d.
# Layout inside the kernel:
#   mf/mp : (L,   block)    lf/lp : (L*L, block)    out : (1, block)
# rows (B*T) on lanes, feature index on sublanes.
# ----------------------------------------------------------------------------
_KL_CHUNK = 256   # lanes per inner chunk; keeps ~O(L) live (L,chunk) vregs under budget


def _kl_kernel(mf_ref, mp_ref, lf_ref, lp_ref, out_ref, *, L, chunk):
    block_n = out_ref.shape[1]
    n_chunks = block_n // chunk
    for c in range(n_chunks):
        sl = slice(c * chunk, (c + 1) * chunk)
        d = mf_ref[:, sl] - mp_ref[:, sl]                       # (L, chunk)

        tr = jnp.zeros((1, chunk), jnp.float32)
        qp = jnp.zeros((1, chunk), jnp.float32)
        logr = jnp.zeros((1, chunk), jnp.float32)               # sum_i log(Lf_ii / Lp_ii)

        a_rows = []    # rows of A = Lp^-1 Lf, each (L, chunk)
        u_elems = []   # elements of u = Lp^-1 d, each (1, chunk)
        for i in range(L):
            lp_row = lp_ref[i * L:(i + 1) * L, sl]              # (L, chunk), aligned (L%8==0)
            lf_row = lf_ref[i * L:(i + 1) * L, sl]              # (L, chunk)

            s_mat = jnp.zeros((L, chunk), jnp.float32)
            s_vec = jnp.zeros((1, chunk), jnp.float32)
            for j in range(i):
                lp_ij = lp_row[j:j + 1, :]                      # (1, chunk)
                s_mat = s_mat + lp_ij * a_rows[j]               # sublane-broadcast * full-lane VPU
                s_vec = s_vec + lp_ij * u_elems[j]

            diag_p = lp_row[i:i + 1, :]                         # (1, chunk)
            diag_f = lf_row[i:i + 1, :]                         # (1, chunk)
            inv_p = 1.0 / diag_p                                # one reciprocal per i (exact)

            a_row = (lf_row - s_mat) * inv_p
            u_i = (d[i:i + 1, :] - s_vec) * inv_p
            a_rows.append(a_row)
            u_elems.append(u_i)

            tr = tr + jnp.sum(a_row * a_row, axis=0, keepdims=True)
            qp = qp + u_i * u_i
            logr = logr + jnp.log(diag_f * inv_p)               # one log per i

        out_ref[:, sl] = 0.5 * (tr + qp - 2.0 * logr - float(L))


def full_rank_mvn_kl_pallas_t(mf_t, lf_t, mp_t, lp_t, B, T, block_rows=8192):
    """KL kernel entry point with inputs already in kernel layout:
       mf_t/mp_t : (L, N)      lf_t/lp_t : (L*L, N)      with N = B*T.
    No padding / transposition is done here (hot path)."""
    L, N = mf_t.shape
    assert N == B * T
    assert lf_t.shape == (L * L, N) and lp_t.shape == (L * L, N)
    # TODO(synk): general L would need the flattened (L*L, N) rows padded to a
    # multiple of 8 sublanes; the stand-in model uses L=8.
    assert L % 8 == 0, "KL kernel assumes L % 8 == 0 (sublane-aligned Cholesky rows)"

    blk = _pick_block(N, block_rows, _KL_CHUNK)
    grid = _cdiv(N, blk)
    per_step = (2 * L + 2 * L * L + 1) * blk * 4

    out = pl.pallas_call(
        functools.partial(_kl_kernel, L=L, chunk=_KL_CHUNK),
        out_shape=jax.ShapeDtypeStruct((1, N), jnp.float32),
        grid_spec=pltpu.PrefetchScalarGridSpec(
            num_scalar_prefetch=0,
            grid=(grid,),
            in_specs=[
                pl.BlockSpec((L, blk), lambda i: (0, i)),
                pl.BlockSpec((L, blk), lambda i: (0, i)),
                pl.BlockSpec((L * L, blk), lambda i: (0, i)),
                pl.BlockSpec((L * L, blk), lambda i: (0, i)),
            ],
            out_specs=pl.BlockSpec((1, blk), lambda i: (0, i)),
        ),
        compiler_params=pltpu.CompilerParams(
            dimension_semantics=("parallel",),
            vmem_limit_bytes=_vmem_limit(per_step),
        ),
    )(mf_t.astype(jnp.float32), mp_t.astype(jnp.float32),
      lf_t.astype(jnp.float32), lp_t.astype(jnp.float32))
    return out[0].reshape(B, T)


def full_rank_mvn_kl_pallas(m_f, P_f_chol, m_p, P_p_chol, block_rows=8192):
    """Convenience wrapper taking the standard (B,T,L)/(B,T,L,L) layout
    (verification path; the hot path feeds pre-laid-out tensors directly)."""
    B, T, L = m_f.shape
    N = B * T
    mf_t = m_f.reshape(N, L).T
    mp_t = m_p.reshape(N, L).T
    lf_t = P_f_chol.reshape(N, L * L).T
    lp_t = P_p_chol.reshape(N, L * L).T
    return full_rank_mvn_kl_pallas_t(mf_t, lf_t, mp_t, lp_t, B, T, block_rows)


# ----------------------------------------------------------------------------
# Pallas kernel 2: Gaussian expected log-likelihood, mean over samples fused.
#   ell(s, row) = -0.5 * ( || (y_row - d) - C z_{s,row} ||^2 / sigma^2
#                          + N_obs*log(2*pi*sigma^2) )
#   output(row) = mean_s ell(s, row)
# Layout: rows on lanes.  z : (S, L, BT)   y-d : (N_obs, BT)   out : (1, BT).
# The sample axis is folded inside the kernel body (single grid axis over rows),
# so z/y are DMA'd once per column block and the accumulator stays in vregs.
# ----------------------------------------------------------------------------
_ELL_CHUNK = 512


def _ell_kernel(z_ref, yd_ref, c_ref, out_ref, *, S, chunk, coef, const):
    block_n = out_ref.shape[1]
    c_mat = c_ref[...]                                    # (N_obs, L), hoisted
    for c0 in range(block_n // chunk):
        sl = slice(c0 * chunk, (c0 + 1) * chunk)
        yd = yd_ref[:, sl]                                # (N_obs, chunk) = y - d
        sq = jnp.zeros((1, chunk), jnp.float32)
        for s in range(S):                                # sample axis folded in-kernel
            z = z_ref[s, :, sl]                           # (L, chunk)
            # Tiny matmul; kernel is DMA-bound so low MXU utilization is acceptable.
            r = yd - jnp.dot(c_mat, z, preferred_element_type=jnp.float32)
            sq = sq + jnp.sum(r * r, axis=0, keepdims=True)
        out_ref[:, sl] = coef * sq + const                # coef/const folded at trace time


def gaussian_ell_mean_pallas_t(y, z_s_t, C_T, d_bias, sigma, B, T, block_cols=16384):
    """ell kernel entry point with samples already in kernel layout:
       z_s_t : (S, L, N) with N = B*T.  y stays in (B, T, N_obs); the single
       wrapper pass over y fuses the (y - d) subtraction with the transpose."""
    S, L, N = z_s_t.shape
    N_obs = y.shape[-1]
    assert N == B * T

    yd_t = (y.astype(jnp.float32)
            - jnp.asarray(d_bias, jnp.float32).reshape(1, 1, N_obs)
            ).reshape(N, N_obs).T                          # (N_obs, N), one pass
    C = jnp.asarray(C_T, jnp.float32).T                    # (N_obs, L)

    sigma = float(sigma)
    coef = -0.5 / (sigma * sigma * float(S))               # includes the 1/S sample mean
    const = -0.5 * float(N_obs) * (LOG_2PI + 2.0 * float(np.log(sigma)))

    blk = _pick_block(N, block_cols, _ELL_CHUNK)
    grid = _cdiv(N, blk)
    per_step = (S * L + N_obs + 1) * blk * 4

    out = pl.pallas_call(
        functools.partial(_ell_kernel, S=S, chunk=_ELL_CHUNK, coef=coef, const=const),
        out_shape=jax.ShapeDtypeStruct((1, N), jnp.float32),
        grid_spec=pltpu.PrefetchScalarGridSpec(
            num_scalar_prefetch=0,
            grid=(grid,),
            in_specs=[
                pl.BlockSpec((S, L, blk), lambda i: (0, 0, i)),
                pl.BlockSpec((N_obs, blk), lambda i: (0, i)),
                pl.BlockSpec((N_obs, L), lambda i: (0, 0)),
            ],
            out_specs=pl.BlockSpec((1, blk), lambda i: (0, i)),
        ),
        compiler_params=pltpu.CompilerParams(
            dimension_semantics=("parallel",),
            vmem_limit_bytes=_vmem_limit(per_step),
        ),
    )(z_s_t.astype(jnp.float32), yd_t, C)
    return out[0].reshape(B, T)


def gaussian_ell_mean_pallas(y, z_s, C_T, d_bias, sigma, block_cols=16384):
    """Convenience wrapper taking z_s in the standard (S, B, T, L) layout
    (verification path only)."""
    S, B, T, L = z_s.shape
    z_s_t = jnp.transpose(z_s, (0, 3, 1, 2)).reshape(S, L, B * T)
    return gaussian_ell_mean_pallas_t(y, z_s_t, C_T, d_bias, sigma, B, T, block_cols)


# ----------------------------------------------------------------------------
# Plain-JAX references (verification only)
# ----------------------------------------------------------------------------
def full_rank_mvn_kl_ref(m_f, P_f_chol, m_p, P_p_chol):
    def one(mf, Lf, mp, Lp):
        A = jax.scipy.linalg.solve_triangular(Lp, Lf, lower=True)
        u = jax.scipy.linalg.solve_triangular(Lp, mf - mp, lower=True)
        tr = jnp.sum(A * A)
        qp = jnp.sum(u * u)
        logdet1 = 2.0 * jnp.sum(jnp.log(jnp.diag(Lf)))
        logdet2 = 2.0 * jnp.sum(jnp.log(jnp.diag(Lp)))
        return 0.5 * (tr + qp + logdet2 - logdet1 - mf.shape[-1])

    B, T, L = m_f.shape
    flat = jax.vmap(one)(m_f.reshape(-1, L), P_f_chol.reshape(-1, L, L),
                         m_p.reshape(-1, L), P_p_chol.reshape(-1, L, L))
    return flat.reshape(B, T)


def gaussian_ell_mean_ref(y, z_s, C_T, d_bias, sigma):
    mu = jnp.einsum('sbtl,ln->sbtn', z_s, C_T) + d_bias[0]
    n_obs = y.shape[-1]
    ell = -0.5 * (jnp.sum((y[None] - mu) ** 2, axis=-1) / (sigma ** 2)
                  + n_obs * (LOG_2PI + 2.0 * np.log(sigma)))
    return ell.mean(axis=0)


# ----------------------------------------------------------------------------
# Model wrapper (deterministic JAX stand-ins for the abstract injected modules)
# ----------------------------------------------------------------------------
def init_params(key, n_obs, L):
    ks = jax.random.split(key, 8)
    s = 0.3
    return dict(
        W_y=s * jax.random.normal(ks[0], (n_obs, L), jnp.float32),
        b_y=s * jax.random.normal(ks[1], (L,), jnp.float32),
        W_Ky=s * jax.random.normal(ks[2], (n_obs, L, L), jnp.float32),
        W_enc=s * jax.random.normal(ks[3], (L, L), jnp.float32),
        b_enc=s * jax.random.normal(ks[4], (L,), jnp.float32),
        W_Kenc=s * jax.random.normal(ks[5], (L, L), jnp.float32),
        A_dyn=s * jax.random.normal(ks[6], (L, L), jnp.float32),
        C_T=s * jax.random.normal(ks[7], (L, n_obs), jnp.float32),
        d_bias=jnp.zeros((1, n_obs), jnp.float32),
    )


class FullRankNonlinearStateSpaceModelPallas:
    """Mirrors FullRankNonlinearStateSpaceModel.forward.

    The injected sub-modules (dynamics_mod, approximation_pdf, likelihood_pdf,
    initial_c_pdf, ell_grad, nl_filter, encoder) are abstract in the PyTorch
    source; they are replaced here by deterministic JAX stand-ins that produce
    the stats/samples with the correct shapes.  The specified hot-path math
    (full_rank_mvn_kl and the Gaussian ell + sample mean) runs in Pallas kernels,
    and the stand-in filter emits its outputs directly in the kernels' layout
    (feature-major / rows-on-lanes) so no extra HBM layout pass is needed.
    """

    def __init__(self, params, n_latents, sigma_obs=0.5):
        self.p = params
        self.L = n_latents
        self.sigma_obs = sigma_obs

    # --- stand-in: ell_grad(y) -> (h_y, K_y) ---
    def ell_grad(self, y):
        h_y = jnp.tanh(jnp.einsum('btn,nl->btl', y, self.p['W_y']) + self.p['b_y'])
        K_y = jnp.tanh(jnp.einsum('btn,nlk->btlk', y, self.p['W_Ky']))
        return h_y, K_y

    # --- stand-in: encoder(h_y, K_y) -> (h_b, K_b) ---
    def encoder(self, h_y, K_y):
        h_b = jnp.tanh(jnp.einsum('btl,lk->btk', h_y, self.p['W_enc']) + self.p['b_enc'])
        K_b = jnp.tanh(jnp.einsum('btlk,km->btlm', K_y, self.p['W_Kenc']))
        return h_b, K_b

    # --- stand-in: nl_filter(k, K, n_samples) -> (z_s_t, stats, stats_t) ---
    def nl_filter(self, key, k, K, n_samples):
        # TODO(synk): the real nonlinear filter (with p_mask dropout) is an abstract
        # injected module; this deterministic stand-in produces well-formed stats.
        L = self.L
        B, T, _ = k.shape
        N = B * T
        m_f = k
        m_p = jnp.tanh(jnp.einsum('btl,lk->btk', k, self.p['A_dyn']))
        M_f = K[..., :L]
        M_p = K[..., L:]
        eye = jnp.eye(L, dtype=jnp.float32)
        P_f = eye * 0.5 + jnp.einsum('btij,btkj->btik', M_f, M_f) / L
        P_p = eye * 0.5 + jnp.einsum('btij,btkj->btik', M_p, M_p) / L
        P_f_chol = jnp.linalg.cholesky(P_f)
        P_p_chol = jnp.linalg.cholesky(P_p)

        # Samples emitted natively in the ell kernel layout (S, L, B*T):
        eps = jax.random.normal(key, (n_samples, B, T, L), jnp.float32)
        z_s_t = (jnp.einsum('btij,sbtj->sibt', P_f_chol, eps).reshape(n_samples, L, N)
                 + m_f.reshape(N, L).T[None])

        stats = dict(m_f=m_f, m_p=m_p, P_f_chol=P_f_chol, P_p_chol=P_p_chol)
        # Feature-major (rows-on-lanes) copies consumed directly by the KL kernel:
        stats_t = dict(
            m_f=m_f.reshape(N, L).T,
            m_p=m_p.reshape(N, L).T,
            P_f_chol=P_f_chol.reshape(N, L * L).T,
            P_p_chol=P_p_chol.reshape(N, L * L).T,
        )
        return z_s_t, stats, stats_t

    def fast_smooth_1_to_T(self, key, y, n_samples, p_mask=0.0):
        h_y, K_y = self.ell_grad(y)
        h_b, K_b = self.encoder(h_y, K_y)
        K = jnp.concatenate([K_b, K_y], axis=-1)
        k = h_b + h_y
        return self.nl_filter(key, k, K, n_samples)

    def forward(self, key, y, n_samples, p_mask=0.0):
        B, T, _ = y.shape
        z_s_t, stats, stats_t = self.fast_smooth_1_to_T(key, y, n_samples, p_mask)

        kl = full_rank_mvn_kl_pallas_t(stats_t['m_f'], stats_t['P_f_chol'],
                                       stats_t['m_p'], stats_t['P_p_chol'],
                                       B, T)                                 # (B, T)
        ell = gaussian_ell_mean_pallas_t(y, z_s_t, self.p['C_T'], self.p['d_bias'],
                                         self.sigma_obs, B, T)               # (B, T)
        loss = kl - ell
        loss = loss.sum(axis=-1).mean()

        # Standard-layout samples for the return value (off the loss critical path).
        z_s = jnp.transpose(z_s_t.reshape(n_samples, self.L, B, T), (0, 2, 3, 1))
        return loss, z_s, stats


# ----------------------------------------------------------------------------
if __name__ == "__main__":
    B, T, N_OBS, L, N_SAMPLES = 4, 8, 16, 8, 4
    SIGMA = 0.5

    key = jax.random.PRNGKey(0)
    k_param, k_y, k_noise = jax.random.split(key, 3)
    params = init_params(k_param, N_OBS, L)
    y = jax.random.normal(k_y, (B, T, N_OBS), jnp.float32)

    model = FullRankNonlinearStateSpaceModelPallas(params, L, sigma_obs=SIGMA)

    forward_jit = jax.jit(lambda k, yy: model.forward(k, yy, N_SAMPLES))
    loss, z_s, stats = forward_jit(k_noise, y)
    jax.block_until_ready((loss, z_s))

    # --- verify the Pallas KL kernel against a plain-JAX reference ---
    kl_pallas = full_rank_mvn_kl_pallas(stats['m_f'], stats['P_f_chol'],
                                        stats['m_p'], stats['P_p_chol'])
    kl_ref = full_rank_mvn_kl_ref(stats['m_f'], stats['P_f_chol'],
                                  stats['m_p'], stats['P_p_chol'])
    np.testing.assert_allclose(np.asarray(kl_pallas), np.asarray(kl_ref),
                               rtol=1e-4, atol=1e-4)

    # --- verify the fused ell-mean kernel against a plain-JAX reference ---
    ell_pallas = gaussian_ell_mean_pallas(y, z_s, params['C_T'], params['d_bias'], SIGMA)
    ell_ref = gaussian_ell_mean_ref(y, z_s, params['C_T'], params['d_bias'], SIGMA)
    np.testing.assert_allclose(np.asarray(ell_pallas), np.asarray(ell_ref),
                               rtol=1e-4, atol=1e-4)

    # --- end-to-end loss consistency (forward used the pre-laid-out hot path) ---
    loss_ref = (kl_ref - ell_ref).sum(axis=-1).mean()
    np.testing.assert_allclose(float(loss), float(loss_ref), rtol=1e-3, atol=1e-2)

    assert np.isfinite(float(loss))
    print("KERNEL_OK")
</pallas_src>

<mosaic_0001>
module attributes {stable_mosaic.version = 11 : i64} {
  func.func @_ell_kernel(%arg0: i32, %arg1: memref<4x8x512xf32, #tpu.memory_space<vmem>>, %arg2: memref<16x512xf32, #tpu.memory_space<vmem>>, %arg3: memref<16x8xf32, #tpu.memory_space<vmem>>, %arg4: memref<1x512xf32, #tpu.memory_space<vmem>>) attributes {dimension_semantics = [#tpu.dimension_semantics<parallel>], iteration_bounds = array<i64: 1>, scalar_prefetch = 0 : i64, scratch_operands = 0 : i64, tpu.core_type = #tpu.core_type<tc>, window_params = [{transform_indices = @transform_0, window_bounds = array<i64: 4, 8, 512>}, {transform_indices = @transform_1, window_bounds = array<i64: 16, 512>}, {pipeline_mode = #tpu.pipeline_mode<synchronous>, transform_indices = @transform_2, window_bounds = array<i64: 16, 8>}, {transform_indices = @transform_3, window_bounds = array<i64: 1, 512>}]} {
    %c0 = arith.constant 0 : index
    %c0_0 = arith.constant 0 : index
    %0 = vector.load %arg3[%c0, %c0_0] : memref<16x8xf32, #tpu.memory_space<vmem>>, vector<16x8xf32>
    %c0_1 = arith.constant 0 : index
    %c0_2 = arith.constant 0 : index
    %1 = vector.load %arg2[%c0_1, %c0_2] : memref<16x512xf32, #tpu.memory_space<vmem>>, vector<16x512xf32>
    %cst = arith.constant 0.000000e+00 : f32
    %2 = vector.broadcast %cst : f32 to vector<1x512xf32>
    %c0_3 = arith.constant 0 : index
    %c0_4 = arith.constant 0 : index
    %c0_5 = arith.constant 0 : index
    %3 = vector.load %arg1[%c0_3, %c0_4, %c0_5] : memref<4x8x512xf32, #tpu.memory_space<vmem>>, vector<1x8x512xf32>
    %4 = vector.shape_cast %3 : vector<1x8x512xf32> to vector<8x512xf32>
    %cst_6 = arith.constant dense<0.000000e+00> : vector<16x512xf32>
    %5 = tpu.matmul %0, %4, %cst_6 {dimension_numbers = #tpu.dot_dimension_numbers<[1], [0], [0], [1], [0, 0, 1, 1], [], []>} : vector<16x8xf32>, vector<8x512xf32>, vector<16x512xf32> -> vector<16x512xf32>
    %6 = arith.subf %1, %5 : vector<16x512xf32>
    %7 = arith.mulf %6, %6 : vector<16x512xf32>
    %cst_7 = arith.constant dense<0.000000e+00> : vector<512xf32>
    %8 = vector.multi_reduction <add>, %7, %cst_7 [0] : vector<16x512xf32> to vector<512xf32>
    %9 = vector.shape_cast %8 : vector<512xf32> to vector<1x512xf32>
    %10 = arith.addf %2, %9 : vector<1x512xf32>
    %c1 = arith.constant 1 : index
    %c0_8 = arith.constant 0 : index
    %c0_9 = arith.constant 0 : index
    %11 = vector.load %arg1[%c1, %c0_8, %c0_9] : memref<4x8x512xf32, #tpu.memory_space<vmem>>, vector<1x8x512xf32>
    %12 = vector.shape_cast %11 : vector<1x8x512xf32> to vector<8x512xf32>
    %cst_10 = arith.constant dense<0.000000e+00> : vector<16x512xf32>
    %13 = tpu.matmul %0, %12, %cst_10 {dimension_numbers = #tpu.dot_dimension_numbers<[1], [0], [0], [1], [0, 0, 1, 1], [], []>} : vector<16x8xf32>, vector<8x512xf32>, vector<16x512xf32> -> vector<16x512xf32>
    %14 = arith.subf %1, %13 : vector<16x512xf32>
    %15 = arith.mulf %14, %14 : vector<16x512xf32>
    %cst_11 = arith.constant dense<0.000000e+00> : vector<512xf32>
    %16 = vector.multi_reduction <add>, %15, %cst_11 [0] : vector<16x512xf32> to vector<512xf32>
    %17 = vector.shape_cast %16 : vector<512xf32> to vector<1x512xf32>
    %18 = arith.addf %10, %17 : vector<1x512xf32>
    %c2 = arith.constant 2 : index
    %c0_12 = arith.constant 0 : index
    %c0_13 = arith.constant 0 : index
    %19 = vector.load %arg1[%c2, %c0_12, %c0_13] : memref<4x8x512xf32, #tpu.memory_space<vmem>>, vector<1x8x512xf32>
    %20 = vector.shape_cast %19 : vector<1x8x512xf32> to vector<8x512xf32>
    %cst_14 = arith.constant dense<0.000000e+00> : vector<16x512xf32>
    %21 = tpu.matmul %0, %20, %cst_14 {dimension_numbers = #tpu.dot_dimension_numbers<[1], [0], [0], [1], [0, 0, 1, 1], [], []>} : vector<16x8xf32>, vector<8x512xf32>, vector<16x512xf32> -> vector<16x512xf32>
    %22 = arith.subf %1, %21 : vector<16x512xf32>
    %23 = arith.mulf %22, %22 : vector<16x512xf32>
    %cst_15 = arith.constant dense<0.000000e+00> : vector<512xf32>
    %24 = vector.multi_reduction <add>, %23, %cst_15 [0] : vector<16x512xf32> to vector<512xf32>
    %25 = vector.shape_cast %24 : vector<512xf32> to vector<1x512xf32>
    %26 = arith.addf %18, %25 : vector<1x512xf32>
    %c3 = arith.constant 3 : index
    %c0_16 = arith.constant 0 : index
    %c0_17 = arith.constant 0 : index
    %27 = vector.load %arg1[%c3, %c0_16, %c0_17] : memref<4x8x512xf32, #tpu.memory_space<vmem>>, vector<1x8x512xf32>
    %28 = vector.shape_cast %27 : vector<1x8x512xf32> to vector<8x512xf32>
    %cst_18 = arith.constant dense<0.000000e+00> : vector<16x512xf32>
    %29 = tpu.matmul %0, %28, %cst_18 {dimension_numbers = #tpu.dot_dimension_numbers<[1], [0], [0], [1], [0, 0, 1, 1], [], []>} : vector<16x8xf32>, vector<8x512xf32>, vector<16x512xf32> -> vector<16x512xf32>
    %30 = arith.subf %1, %29 : vector<16x512xf32>
    %31 = arith.mulf %30, %30 : vector<16x512xf32>
    %cst_19 = arith.constant dense<0.000000e+00> : vector<512xf32>
    %32 = vector.multi_reduction <add>, %31, %cst_19 [0] : vector<16x512xf32> to vector<512xf32>
    %33 = vector.shape_cast %32 : vector<512xf32> to vector<1x512xf32>
    %34 = arith.addf %26, %33 : vector<1x512xf32>
    %cst_20 = arith.constant -5.000000e-01 : f32
    %35 = vector.broadcast %cst_20 : f32 to vector<1x512xf32>
    %36 = arith.mulf %35, %34 : vector<1x512xf32>
    %cst_21 = arith.constant -3.6126616 : f32
    %37 = vector.broadcast %cst_21 : f32 to vector<1x512xf32>
    %38 = arith.addf %36, %37 : vector<1x512xf32>
    %c0_22 = arith.constant 0 : index
    %c0_23 = arith.constant 0 : index
    %39 = vector.load %arg4[%c0_22, %c0_23] : memref<1x512xf32, #tpu.memory_space<vmem>>, vector<1x512xf32>
    tpu.vector_store %arg4[%c0_22, %c0_23], %38 {strides = array<i32>} : memref<1x512xf32, #tpu.memory_space<vmem>>, vector<1x512xf32>,
    return
  }
  func.func @transform_0(%arg0: i32) -> (i32, i32, i32) {
    %c0_i32 = arith.constant 0 : i32
    %c0_i32_0 = arith.constant 0 : i32
    %c0_i32_1 = arith.constant 0 : i32
    return %c0_i32, %c0_i32_0, %arg0 : i32, i32, i32
  }
  func.func @transform_1(%arg0: i32) -> (i32, i32) {
    %c0_i32 = arith.constant 0 : i32
    %c0_i32_0 = arith.constant 0 : i32
    return %c0_i32, %arg0 : i32, i32
  }
  func.func @transform_2(%arg0: i32) -> (i32, i32) {
    %c0_i32 = arith.constant 0 : i32
    %c0_i32_0 = arith.constant 0 : i32
    %c0_i32_1 = arith.constant 0 : i32
    return %c0_i32, %c0_i32_0 : i32, i32
  }
  func.func @transform_3(%arg0: i32) -> (i32, i32) {
    %c0_i32 = arith.constant 0 : i32
    %c0_i32_0 = arith.constant 0 : i32
    return %c0_i32, %arg0 : i32, i32
  }
}

module attributes {stable_mosaic.version = 11 : i64} {
  func.func @_kl_kernel(%arg0: i32, %arg1: memref<8x256xf32, #tpu.memory_space<vmem>>, %arg2: memref<8x256xf32, #tpu.memory_space<vmem>>, %arg3: memref<64x256xf32, #tpu.memory_space<vmem>>, %arg4: memref<64x256xf32, #tpu.memory_space<vmem>>, %arg5: memref<1x256xf32, #tpu.memory_space<vmem>>) attributes {dimension_semantics = [#tpu.dimension_semantics<parallel>], iteration_bounds = array<i64: 1>, scalar_prefetch = 0 : i64, scratch_operands = 0 : i64, tpu.core_type = #tpu.core_type<tc>, window_params = [{transform_indices = @transform_0, window_bounds = array<i64: 8, 256>}, {transform_indices = @transform_1, window_bounds = array<i64: 8, 256>}, {transform_indices = @transform_2, window_bounds = array<i64: 64, 256>}, {transform_indices = @transform_3, window_bounds = array<i64: 64, 256>}, {transform_indices = @transform_4, window_bounds = array<i64: 1, 256>}]} {
    %c0 = arith.constant 0 : index
    %c0_0 = arith.constant 0 : index
    %0 = vector.load %arg1[%c0, %c0_0] : memref<8x256xf32, #tpu.memory_space<vmem>>, vector<8x256xf32>
    %c0_1 = arith.constant 0 : index
    %c0_2 = arith.constant 0 : index
    %1 = vector.load %arg2[%c0_1, %c0_2] : memref<8x256xf32, #tpu.memory_space<vmem>>, vector<8x256xf32>
    %2 = arith.subf %0, %1 : vector<8x256xf32>
    %cst = arith.constant 0.000000e+00 : f32
    %3 = vector.broadcast %cst : f32 to vector<1x256xf32>
    %cst_3 = arith.constant 0.000000e+00 : f32
    %4 = vector.broadcast %cst_3 : f32 to vector<1x256xf32>
    %cst_4 = arith.constant 0.000000e+00 : f32
    %5 = vector.broadcast %cst_4 : f32 to vector<1x256xf32>
    %c0_5 = arith.constant 0 : index
    %c0_6 = arith.constant 0 : index
    %6 = vector.load %arg4[%c0_5, %c0_6] : memref<64x256xf32, #tpu.memory_space<vmem>>, vector<8x256xf32>
    %c0_7 = arith.constant 0 : index
    %c0_8 = arith.constant 0 : index
    %7 = vector.load %arg3[%c0_7, %c0_8] : memref<64x256xf32, #tpu.memory_space<vmem>>, vector<8x256xf32>
    %cst_9 = arith.constant 0.000000e+00 : f32
    %8 = vector.broadcast %cst_9 : f32 to vector<8x256xf32>
    %cst_10 = arith.constant 0.000000e+00 : f32
    %9 = vector.broadcast %cst_10 : f32 to vector<1x256xf32>
    %10 = vector.extract_strided_slice %6 {offsets = [0, 0], sizes = [1, 256], strides = [1, 1]} : vector<8x256xf32> to vector<1x256xf32>
    %11 = vector.extract_strided_slice %7 {offsets = [0, 0], sizes = [1, 256], strides = [1, 1]} : vector<8x256xf32> to vector<1x256xf32>
    %cst_11 = arith.constant 1.000000e+00 : f32
    %12 = vector.broadcast %cst_11 : f32 to vector<1x256xf32>
    %13 = arith.divf %12, %10 : vector<1x256xf32>
    %14 = arith.subf %7, %8 : vector<8x256xf32>
    %15 = vector.broadcast %13 : vector<1x256xf32> to vector<8x256xf32>
    %16 = arith.mulf %14, %15 : vector<8x256xf32>
    %17 = vector.extract_strided_slice %2 {offsets = [0, 0], sizes = [1, 256], strides = [1, 1]} : vector<8x256xf32> to vector<1x256xf32>
    %18 = arith.subf %17, %9 : vector<1x256xf32>
    %19 = arith.mulf %18, %13 : vector<1x256xf32>
    %20 = arith.mulf %16, %16 : vector<8x256xf32>
    %cst_12 = arith.constant dense<0.000000e+00> : vector<256xf32>
    %21 = vector.multi_reduction <add>, %20, %cst_12 [0] : vector<8x256xf32> to vector<256xf32>
    %22 = vector.shape_cast %21 : vector<256xf32> to vector<1x256xf32>
    %23 = arith.addf %3, %22 : vector<1x256xf32>
    %24 = arith.mulf %19, %19 : vector<1x256xf32>
    %25 = arith.addf %4, %24 : vector<1x256xf32>
    %26 = arith.mulf %11, %13 : vector<1x256xf32>
    %27 = math.log %26 : vector<1x256xf32>
    %28 = arith.addf %5, %27 : vector<1x256xf32>
    %c8 = arith.constant 8 : index
    %c0_13 = arith.constant 0 : index
    %29 = vector.load %arg4[%c8, %c0_13] : memref<64x256xf32, #tpu.memory_space<vmem>>, vector<8x256xf32>
    %c8_14 = arith.constant 8 : index
    %c0_15 = arith.constant 0 : index
    %30 = vector.load %arg3[%c8_14, %c0_15] : memref<64x256xf32, #tpu.memory_space<vmem>>, vector<8x256xf32>
    %cst_16 = arith.constant 0.000000e+00 : f32
    %31 = vector.broadcast %cst_16 : f32 to vector<8x256xf32>
    %cst_17 = arith.constant 0.000000e+00 : f32
    %32 = vector.broadcast %cst_17 : f32 to vector<1x256xf32>
    %33 = vector.extract_strided_slice %29 {offsets = [0, 0], sizes = [1, 256], strides = [1, 1]} : vector<8x256xf32> to vector<1x256xf32>
    %34 = vector.broadcast %33 : vector<1x256xf32> to vector<8x256xf32>
    %35 = arith.mulf %34, %16 : vector<8x256xf32>
    %36 = arith.addf %31, %35 : vector<8x256xf32>
    %37 = arith.mulf %33, %19 : vector<1x256xf32>
    %38 = arith.addf %32, %37 : vector<1x256xf32>
    %39 = vector.extract_strided_slice %29 {offsets = [1, 0], sizes = [1, 256], strides = [1, 1]} : vector<8x256xf32> to vector<1x256xf32>
    %40 = vector.extract_strided_slice %30 {offsets = [1, 0], sizes = [1, 256], strides = [1, 1]} : vector<8x256xf32> to vector<1x256xf32>
    %cst_18 = arith.constant 1.000000e+00 : f32
    %41 = vector.broadcast %cst_18 : f32 to vector<1x256xf32>
    %42 = arith.divf %41, %39 : vector<1x256xf32>
    %43 = arith.subf %30, %36 : vector<8x256xf32>
    %44 = vector.broadcast %42 : vector<1x256xf32> to vector<8x256xf32>
    %45 = arith.mulf %43, %44 : vector<8x256xf32>
    %46 = vector.extract_strided_slice %2 {offsets = [1, 0], sizes = [1, 256], strides = [1, 1]} : vector<8x256xf32> to vector<1x256xf32>
    %47 = arith.subf %46, %38 : vector<1x256xf32>
    %48 = arith.mulf %47, %42 : vector<1x256xf32>
    %49 = arith.mulf %45, %45 : vector<8x256xf32>
    %cst_19 = arith.constant dense<0.000000e+00> : vector<256xf32>
    %50 = vector.multi_reduction <add>, %49, %cst_19 [0] : vector<8x256xf32> to vector<256xf32>
    %51 = vector.shape_cast %50 : vector<256xf32> to vector<1x256xf32>
    %52 = arith.addf %23, %51 : vector<1x256xf32>
    %53 = arith.mulf %48, %48 : vector<1x256xf32>
    %54 = arith.addf %25, %53 : vector<1x256xf32>
    %55 = arith.mulf %40, %42 : vector<1x256xf32>
    %56 = math.log %55 : vector<1x256xf32>
    %57 = arith.addf %28, %56 : vector<1x256xf32>
    %c16 = arith.constant 16 : index
    %c0_20 = arith.constant 0 : index
    %58 = vector.load %arg4[%c16, %c0_20] : memref<64x256xf32, #tpu.memory_space<vmem>>, vector<8x256xf32>
    %c16_21 = arith.constant 16 : index
    %c0_22 = arith.constant 0 : index
    %59 = vector.load %arg3[%c16_21, %c0_22] : memref<64x256xf32, #tpu.memory_space<vmem>>, vector<8x256xf32>
    %cst_23 = arith.constant 0.000000e+00 : f32
    %60 = vector.broadcast %cst_23 : f32 to vector<8x256xf32>
    %cst_24 = arith.constant 0.000000e+00 : f32
    %61 = vector.broadcast %cst_24 : f32 to vector<1x256xf32>
    %62 = vector.extract_strided_slice %58 {offsets = [0, 0], sizes = [1, 256], strides = [1, 1]} : vector<8x256xf32> to vector<1x256xf32>
    %63 = vector.broadcast %62 : vector<1x256xf32> to vector<8x256xf32>
    %64 = arith.mulf %63, %16 : vector<8x256xf32>
    %65 = arith.addf %60, %64 : vector<8x256xf32>
    %66 = arith.mulf %62, %19 : vector<1x256xf32>
    %67 = arith.addf %61, %66 : vector<1x256xf32>
    %68 = vector.extract_strided_slice %58 {offsets = [1, 0], sizes = [1, 256], strides = [1, 1]} : vector<8x256xf32> to vector<1x256xf32>
    %69 = vector.broadcast %68 : vector<1x256xf32> to vector<8x256xf32>
    %70 = arith.mulf %69, %45 : vector<8x256xf32>
    %71 = arith.addf %65, %70 : vector<8x256xf32>
    %72 = arith.mulf %68, %48 : vector<1x256xf32>
    %73 = arith.addf %67, %72 : vector<1x256xf32>
    %74 = vector.extract_strided_slice %58 {offsets = [2, 0], sizes = [1, 256], strides = [1, 1]} : vector<8x256xf32> to vector<1x256xf32>
    %75 = vector.extract_strided_slice %59 {offsets = [2, 0], sizes = [1, 256], strides = [1, 1]} : vector<8x256xf32> to vector<1x256xf32>
    %cst_25 = arith.constant 1.000000e+00 : f32
    %76 = vector.broadcast %cst_25 : f32 to vector<1x256xf32>
    %77 = arith.divf %76, %74 : vector<1x256xf32>
    %78 = arith.subf %59, %71 : vector<8x256xf32>
    %79 = vector.broadcast %77 : vector<1x256xf32> to vector<8x256xf32>
    %80 = arith.mulf %78, %79 : vector<8x256xf32>
    %81 = vector.extract_strided_slice %2 {offsets = [2, 0], sizes = [1, 256], strides = [1, 1]} : vector<8x256xf32> to vector<1x256xf32>
    %82 = arith.subf %81, %73 : vector<1x256xf32>
    %83 = arith.mulf %82, %77 : vector<1x256xf32>
    %84 = arith.mulf %80, %80 : vector<8x256xf32>
    %cst_26 = arith.constant dense<0.000000e+00> : vector<256xf32>
    %85 = vector.multi_reduction <add>, %84, %cst_26 [0] : vector<8x256xf32> to vector<256xf32>
    %86 = vector.shape_cast %85 : vector<256xf32> to vector<1x256xf32>
    %87 = arith.addf %52, %86 : vector<1x256xf32>
    %88 = arith.mulf %83, %83 : vector<1x256xf32>
    %89 = arith.addf %54, %88 : vector<1x256xf32>
    %90 = arith.mulf %75, %77 : vector<1x256xf32>
    %91 = math.log %90 : vector<1x256xf32>
    %92 = arith.addf %57, %91 : vector<1x256xf32>
    %c24 = arith.constant 24 : index
    %c0_27 = arith.constant 0 : index
    %93 = vector.load %arg4[%c24, %c0_27] : memref<64x256xf32, #tpu.memory_space<vmem>>, vector<8x256xf32>
    %c24_28 = arith.constant 24 : index
    %c0_29 = arith.constant 0 : index
    %94 = vector.load %arg3[%c24_28, %c0_29] : memref<64x256xf32, #tpu.memory_space<vmem>>, vector<8x256xf32>
    %cst_30 = arith.constant 0.000000e+00 : f32
    %95 = vector.broadcast %cst_30 : f32 to vector<8x256xf32>
    %cst_31 = arith.constant 0.000000e+00 : f32
    %96 = vector.broadcast %cst_31 : f32 to vector<1x256xf32>
    %97 = vector.extract_strided_slice %93 {offsets = [0, 0], sizes = [1, 256], strides = [1, 1]} : vector<8x256xf32> to vector<1x256xf32>
    %98 = vector.broadcast %97 : vector<1x256xf32> to vector<8x256xf32>
    %99 = arith.mulf %98, %16 : vector<8x256xf32>
    %100 = arith.addf %95, %99 : vector<8x256xf32>
    %101 = arith.mulf %97, %19 : vector<1x256xf32>
    %102 = arith.addf %96, %101 : vector<1x256xf32>
    %103 = vector.extract_strided_slice %93 {offsets = [1, 0], sizes = [1, 256], strides = [1, 1]} : vector<8x256xf32> to vector<1x256xf32>
    %104 = vector.broadcast %103 : vector<1x256xf32> to vector<8x256xf32>
    %105 = arith.mulf %104, %45 : vector<8x256xf32>
    %106 = arith.addf %100, %105 : vector<8x256xf32>
    %107 = arith.mulf %103, %48 : vector<1x256xf32>
    %108 = arith.addf %102, %107 : vector<1x256xf32>
    %109 = vector.extract_strided_slice %93 {offsets = [2, 0], sizes = [1, 256], strides = [1, 1]} : vector<8x256xf32> to vector<1x256xf32>
    %110 = vector.broadcast %109 : vector<1x256xf32> to vector<8x256xf32>
    %111 = arith.mulf %110, %80 : vector<8x256xf32>
    %112 = arith.addf %106, %111 : vector<8x256xf32>
    %113 = arith.mulf %109, %83 : vector<1x256xf32>
    %114 = arith.addf %108, %113 : vector<1x256xf32>
    %115 = vector.extract_strided_slice %93 {offsets = [3, 0], sizes = [1, 256], strides = [1, 1]} : vector<8x256xf32> to vector<1x256xf32>
    %116 = vector.extract_strided_slice %94 {offsets = [3, 0], sizes = [1, 256], strides = [1, 1]} : vector<8x256xf32> to vector<1x256xf32>
    %cst_32 = arith.constant 1.000000e+00 : f32
    %117 = vector.broadcast %cst_32 : f32 to vector<1x256xf32>
    %118 = arith.divf %117, %115 : vector<1x256xf32>
    %119 = arith.subf %94, %112 : vector<8x256xf32>
    %120 = vector.broadcast %118 : vector<1x256xf32> to vector<8x256xf32>
    %121 = arith.mulf %119, %120 : vector<8x256xf32>
    %122 = vector.extract_strided_slice %2 {offsets = [3, 0], sizes = [1, 256], strides = [1, 1]} : vector<8x256xf32> to vector<1x256xf32>
    %123 = arith.subf %122, %114 : vector<1x256xf32>
    %124 = arith.mulf %123, %118 : vector<1x256xf32>
    %125 = arith.mulf %121, %121 : vector<8x256xf32>
    %cst_33 = arith.constant dense<0.000000e+00> : vector<256xf32>
    %126 = vector.multi_reduction <add>, %125, %cst_33 [0] : vector<8x256xf32> to vector<256xf32>
    %127 = vector.shape_cast %126 : vector<256xf32> to vector<1x256xf32>
    %128 = arith.addf %87, %127 : vector<1x256xf32>
    %129 = arith.mulf %124, %124 : vector<1x256xf32>
    %130 = arith.addf %89, %129 : vector<1x256xf32>
    %131 = arith.mulf %116, %118 : vector<1x256xf32>
    %132 = math.log %131 : vector<1x256xf32>
    %133 = arith.addf %92, %132 : vector<1x256xf32>
    %c32 = arith.constant 32 : index
    %c0_34 = arith.constant 0 : index
    %134 = vector.load %arg4[%c32, %c0_34] : memref<64x256xf32, #tpu.memory_space<vmem>>, vector<8x256xf32>
    %c32_35 = arith.constant 32 : index
    %c0_36 = arith.constant 0 : index
    %135 = vector.load %arg3[%c32_35, %c0_36] : memref<64x256xf32, #tpu.memory_space<vmem>>, vector<8x256xf32>
    %cst_37 = arith.constant 0.000000e+00 : f32
    %136 = vector.broadcast %cst_37 : f32 to vector<8x256xf32>
    %cst_38 = arith.constant 0.000000e+00 : f32
    %137 = vector.broadcast %cst_38 : f32 to vector<1x256xf32>
    %138 = vector.extract_strided_slice %134 {offsets = [0, 0], sizes = [1, 256], strides = [1, 1]} : vector<8x256xf32> to vector<1x256xf32>
    %139 = vector.broadcast %138 : vector<1x256xf32> to vector<8x256xf32>
    %140 = arith.mulf %139, %16 : vector<8x256xf32>
    %141 = arith.addf %136, %140 : vector<8x256xf32>
    %142 = arith.mulf %138, %19 : vector<1x256xf32>
    %143 = arith.addf %137, %142 : vector<1x256xf32>
    %144 = vector.extract_strided_slice %134 {offsets = [1, 0], sizes = [1, 256], strides = [1, 1]} : vector<8x256xf32> to vector<1x256xf32>
    %145 = vector.broadcast %144 : vector<1x256xf32> to vector<8x256xf32>
    %146 = arith.mulf %145, %45 : vector<8x256xf32>
    %147 = arith.addf %141, %146 : vector<8x256xf32>
    %148 = arith.mulf %144, %48 : vector<1x256xf32>
    %149 = arith.addf %143, %148 : vector<1x256xf32>
    %150 = vector.extract_strided_slice %134 {offsets = [2, 0], sizes = [1, 256], strides = [1, 1]} : vector<8x256xf32> to vector<1x256xf32>
    %151 = vector.broadcast %150 : vector<1x256xf32> to vector<8x256xf32>
    %152 = arith.mulf %151, %80 : vector<8x256xf32>
    %153 = arith.addf %147, %152 : vector<8x256xf32>
    %154 = arith.mulf %150, %83 : vector<1x256xf32>
    %155 = arith.addf %149, %154 : vector<1x256xf32>
    %156 = vector.extract_strided_slice %134 {offsets = [3, 0], sizes = [1, 256], strides = [1, 1]} : vector<8x256xf32> to vector<1x256xf32>
    %157 = vector.broadcast %156 : vector<1x256xf32> to vector<8x256xf32>
    %158 = arith.mulf %157, %121 : vector<8x256xf32>
    %159 = arith.addf %153, %158 : vector<8x256xf32>
    %160 = arith.mulf %156, %124 : vector<1x256xf32>
    %161 = arith.addf %155, %160 : vector<1x256xf32>
    %162 = vector.extract_strided_slice %134 {offsets = [4, 0], sizes = [1, 256], strides = [1, 1]} : vector<8x256xf32> to vector<1x256xf32>
    %163 = vector.extract_strided_slice %135 {offsets = [4, 0], sizes = [1, 256], strides = [1, 1]} : vector<8x256xf32> to vector<1x256xf32>
    %cst_39 = arith.constant 1.000000e+00 : f32
    %164 = vector.broadcast %cst_39 : f32 to vector<1x256xf32>
    %165 = arith.divf %164, %162 : vector<1x256xf32>
    %166 = arith.subf %135, %159 : vector<8x256xf32>
    %167 = vector.broadcast %165 : vector<1x256xf32> to vector<8x256xf32>
    %168 = arith.mulf %166, %167 : vector<8x256xf32>
    %169 = vector.extract_strided_slice %2 {offsets = [4, 0], sizes = [1, 256], strides = [1, 1]} : vector<8x256xf32> to vector<1x256xf32>
    %170 = arith.subf %169, %161 : vector<1x256xf32>
    %171 = arith.mulf %170, %165 : vector<1x256xf32>
    %172 = arith.mulf %168, %168 : vector<8x256xf32>
    %cst_40 = arith.constant dense<0.000000e+00> : vector<256xf32>
    %173 = vector.multi_reduction <add>, %172, %cst_40 [0] : vector<8x256xf32> to vector<256xf32>
    %174 = vector.shape_cast %173 : vector<256xf32> to vector<1x256xf32>
    %175 = arith.addf %128, %174 : vector<1x256xf32>
    %176 = arith.mulf %171, %171 : vector<1x256xf32>
    %177 = arith.addf %130, %176 : vector<1x256xf32>
    %178 = arith.mulf %163, %165 : vector<1x256xf32>
    %179 = math.log %178 : vector<1x256xf32>
    %180 = arith.addf %133, %179 : vector<1x256xf32>
    %c40 = arith.constant 40 : index
    %c0_41 = arith.constant 0 : index
    %181 = vector.load %arg4[%c40, %c0_41] : memref<64x256xf32, #tpu.memory_space<vmem>>, vector<8x256xf32>
    %c40_42 = arith.constant 40 : index
    %c0_43 = arith.constant 0 : index
    %182 = vector.load %arg3[%c40_42, %c0_43] : memref<64x256xf32, #tpu.memory_space<vmem>>, vector<8x256xf32>
    %cst_44 = arith.constant 0.000000e+00 : f32
    %183 = vector.broadcast %cst_44 : f32 to vector<8x256xf32>
    %cst_45 = arith.constant 0.000000e+00 : f32
    %184 = vector.broadcast %cst_45 : f32 to vector<1x256xf32>
    %185 = vector.extract_strided_slice %181 {offsets = [0, 0], sizes = [1, 256], strides = [1, 1]} : vector<8x256xf32> to vector<1x256xf32>
    %186 = vector.broadcast %185 : vector<1x256xf32> to vector<8x256xf32>
    %187 = arith.mulf %186, %16 : vector<8x256xf32>
    %188 = arith.addf %183, %187 : vector<8x256xf32>
    %189 = arith.mulf %185, %19 : vector<1x256xf32>
    %190 = arith.addf %184, %189 : vector<1x256xf32>
    %191 = vector.extract_strided_slice %181 {offsets = [1, 0], sizes = [1, 256], strides = [1, 1]} : vector<8x256xf32> to vector<1x256xf32>
    %192 = vector.broadcast %191 : vector<1x256xf32> to vector<8x256xf32>
    %193 = arith.mulf %192, %45 : vector<8x256xf32>
    %194 = arith.addf %188, %193 : vector<8x256xf32>
    %195 = arith.mulf %191, %48 : vector<1x256xf32>
    %196 = arith.addf %190, %195 : vector<1x256xf32>
    %197 = vector.extract_strided_slice %181 {offsets = [2, 0], sizes = [1, 256], strides = [1, 1]} : vector<8x256xf32> to vector<1x256xf32>
    %198 = vector.broadcast %197 : vector<1x256xf32> to vector<8x256xf32>
    %199 = arith.mulf %198, %80 : vector<8x256xf32>
    %200 = arith.addf %194, %199 : vector<8x256xf32>
    %201 = arith.mulf %197, %83 : vector<1x256xf32>
    %202 = arith.addf %196, %201 : vector<1x256xf32>
    %203 = vector.extract_strided_slice %181 {offsets = [3, 0], sizes = [1, 256], strides = [1, 1]} : vector<8x256xf32> to vector<1x256xf32>
    %204 = vector.broadcast %203 : vector<1x256xf32> to vector<8x256xf32>
    %205 = arith.mulf %204, %121 : vector<8x256xf32>
    %206 = arith.addf %200, %205 : vector<8x256xf32>
    %207 = arith.mulf %203, %124 : vector<1x256xf32>
    %208 = arith.addf %202, %207 : vector<1x256xf32>
    %209 = vector.extract_strided_slice %181 {offsets = [4, 0], sizes = [1, 256], strides = [1, 1]} : vector<8x256xf32> to vector<1x256xf32>
    %210 = vector.broadcast %209 : vector<1x256xf32> to vector<8x256xf32>
    %211 = arith.mulf %210, %168 : vector<8x256xf32>
    %212 = arith.addf %206, %211 : vector<8x256xf32>
    %213 = arith.mulf %209, %171 : vector<1x256xf32>
    %214 = arith.addf %208, %213 : vector<1x256xf32>
    %215 = vector.extract_strided_slice %181 {offsets = [5, 0], sizes = [1, 256], strides = [1, 1]} : vector<8x256xf32> to vector<1x256xf32>
    %216 = vector.extract_strided_slice %182 {offsets = [5, 0], sizes = [1, 256], strides = [1, 1]} : vector<8x256xf32> to vector<1x256xf32>
    %cst_46 = arith.constant 1.000000e+00 : f32
    %217 = vector.broadcast %cst_46 : f32 to vector<1x256xf32>
    %218 = arith.divf %217, %215 : vector<1x256xf32>
    %219 = arith.subf %182, %212 : vector<8x256xf32>
    %220 = vector.broadcast %218 : vector<1x256xf32> to vector<8x256xf32>
    %221 = arith.mulf %219, %220 : vector<8x256xf32>
    %222 = vector.extract_strided_slice %2 {offsets = [5, 0], sizes = [1, 256], strides = [1, 1]} : vector<8x256xf32> to vector<1x256xf32>
    %223 = arith.subf %222, %214 : vector<1x256xf32>
    %224 = arith.mulf %223, %218 : vector<1x256xf32>
    %225 = arith.mulf %221, %221 : vector<8x256xf32>
    %cst_47 = arith.constant dense<0.000000e+00> : vector<256xf32>
    %226 = vector.multi_reduction <add>, %225, %cst_47 [0] : vector<8x256xf32> to vector<256xf32>
    %227 = vector.shape_cast %226 : vector<256xf32> to vector<1x256xf32>
    %228 = arith.addf %175, %227 : vector<1x256xf32>
    %229 = arith.mulf %224, %224 : vector<1x256xf32>
    %230 = arith.addf %177, %229 : vector<1x256xf32>
    %231 = arith.mulf %216, %218 : vector<1x256xf32>
    %232 = math.log %231 : vector<1x256xf32>
    %233 = arith.addf %180, %232 : vector<1x256xf32>
    %c48 = arith.constant 48 : index
    %c0_48 = arith.constant 0 : index
    %234 = vector.load %arg4[%c48, %c0_48] : memref<64x256xf32, #tpu.memory_space<vmem>>, vector<8x256xf32>
    %c48_49 = arith.constant 48 : index
    %c0_50 = arith.constant 0 : index
    %235 = vector.load %arg3[%c48_49, %c0_50] : memref<64x256xf32, #tpu.memory_space<vmem>>, vector<8x256xf32>
    %cst_51 = arith.constant 0.000000e+00 : f32
    %236 = vector.broadcast %cst_51 : f32 to vector<8x256xf32>
    %cst_52 = arith.constant 0.000000e+00 : f32
    %237 = vector.broadcast %cst_52 : f32 to vector<1x256xf32>
    %238 = vector.extract_strided_slice %234 {offsets = [0, 0], sizes = [1, 256], strides = [1, 1]} : vector<8x256xf32> to vector<1x256xf32>
    %239 = vector.broadcast %238 : vector<1x256xf32> to vector<8x256xf32>
    %240 = arith.mulf %239, %16 : vector<8x256xf32>
    %241 = arith.addf %236, %240 : vector<8x256xf32>
    %242 = arith.mulf %238, %19 : vector<1x256xf32>
    %243 = arith.addf %237, %242 : vector<1x256xf32>
    %244 = vector.extract_strided_slice %234 {offsets = [1, 0], sizes = [1, 256], strides = [1, 1]} : vector<8x256xf32> to vector<1x256xf32>
    %245 = vector.broadcast %244 : vector<1x256xf32> to vector<8x256xf32>
    %246 = arith.mulf %245, %45 : vector<8x256xf32>
    %247 = arith.addf %241, %246 : vector<8x256xf32>
    %248 = arith.mulf %244, %48 : vector<1x256xf32>
    %249 = arith.addf %243, %248 : vector<1x256xf32>
    %250 = vector.extract_strided_slice %234 {offsets = [2, 0], sizes = [1, 256], strides = [1, 1]} : vector<8x256xf32> to vector<1x256xf32>
    %251 = vector.broadcast %250 : vector<1x256xf32> to vector<8x256xf32>
    %252 = arith.mulf %251, %80 : vector<8x256xf32>
    %253 = arith.addf %247, %252 : vector<8x256xf32>
    %254 = arith.mulf %250, %83 : vector<1x256xf32>
    %255 = arith.addf %249, %254 : vector<1x256xf32>
    %256 = vector.extract_strided_slice %234 {offsets = [3, 0], sizes = [1, 256], strides = [1, 1]} : vector<8x256xf32> to vector<1x256xf32>
    %257 = vector.broadcast %256 : vector<1x256xf32> to vector<8x256xf32>
    %258 = arith.mulf %257, %121 : vector<8x256xf32>
    %259 = arith.addf %253, %258 : vector<8x256xf32>
    %260 = arith.mulf %256, %124 : vector<1x256xf32>
    %261 = arith.addf %255, %260 : vector<1x256xf32>
    %262 = vector.extract_strided_slice %234 {offsets = [4, 0], sizes = [1, 256], strides = [1, 1]} : vector<8x256xf32> to vector<1x256xf32>
    %263 = vector.broadcast %262 : vector<1x256xf32> to vector<8x256xf32>
    %264 = arith.mulf %263, %168 : vector<8x256xf32>
    %265 = arith.addf %259, %264 : vector<8x256xf32>
    %266 = arith.mulf %262, %171 : vector<1x256xf32>
    %267 = arith.addf %261, %266 : vector<1x256xf32>
    %268 = vector.extract_strided_slice %234 {offsets = [5, 0], sizes = [1, 256], strides = [1, 1]} : vector<8x256xf32> to vector<1x256xf32>
    %269 = vector.broadcast %268 : vector<1x256xf32> to vector<8x256xf32>
    %270 = arith.mulf %269, %221 : vector<8x256xf32>
    %271 = arith.addf %265, %270 : vector<8x256xf32>
    %272 = arith.mulf %268, %224 : vector<1x256xf32>
    %273 = arith.addf %267, %272 : vector<1x256xf32>
    %274 = vector.extract_strided_slice %234 {offsets = [6, 0], sizes = [1, 256], strides = [1, 1]} : vector<8x256xf32> to vector<1x256xf32>
    %275 = vector.extract_strided_slice %235 {offsets = [6, 0], sizes = [1, 256], strides = [1, 1]} : vector<8x256xf32> to vector<1x256xf32>
    %cst_53 = arith.constant 1.000000e+00 : f32
    %276 = vector.broadcast %cst_53 : f32 to vector<1x256xf32>
    %277 = arith.divf %276, %274 : vector<1x256xf32>
    %278 = arith.subf %235, %271 : vector<8x256xf32>
    %279 = vector.broadcast %277 : vector<1x256xf32> to vector<8x256xf32>
    %280 = arith.mulf %278, %279 : vector<8x256xf32>
    %281 = vector.extract_strided_slice %2 {offsets = [6, 0], sizes = [1, 256], strides = [1, 1]} : vector<8x256xf32> to vector<1x256xf32>
    %282 = arith.subf %281, %273 : vector<1x256xf32>
    %283 = arith.mulf %282, %277 : vector<1x256xf32>
    %284 = arith.mulf %280, %280 : vector<8x256xf32>
    %cst_54 = arith.constant dense<0.000000e+00> : vector<256xf32>
    %285 = vector.multi_reduction <add>, %284, %cst_54 [0] : vector<8x256xf32> to vector<256xf32>
    %286 = vector.shape_cast %285 : vector<256xf32> to vector<1x256xf32>
    %287 = arith.addf %228, %286 : vector<1x256xf32>
    %288 = arith.mulf %283, %283 : vector<1x256xf32>
    %289 = arith.addf %230, %288 : vector<1x256xf32>
    %290 = arith.mulf %275, %277 : vector<1x256xf32>
    %291 = math.log %290 : vector<1x256xf32>
    %292 = arith.addf %233, %291 : vector<1x256xf32>
    %c56 = arith.constant 56 : index
    %c0_55 = arith.constant 0 : index
    %293 = vector.load %arg4[%c56, %c0_55] : memref<64x256xf32, #tpu.memory_space<vmem>>, vector<8x256xf32>
    %c56_56 = arith.constant 56 : index
    %c0_57 = arith.constant 0 : index
    %294 = vector.load %arg3[%c56_56, %c0_57] : memref<64x256xf32, #tpu.memory_space<vmem>>, vector<8x256xf32>
    %cst_58 = arith.constant 0.000000e+00 : f32
    %295 = vector.broadcast %cst_58 : f32 to vector<8x256xf32>
    %cst_59 = arith.constant 0.000000e+00 : f32
    %296 = vector.broadcast %cst_59 : f32 to vector<1x256xf32>
    %297 = vector.extract_strided_slice %293 {offsets = [0, 0], sizes = [1, 256], strides = [1, 1]} : vector<8x256xf32> to vector<1x256xf32>
    %298 = vector.broadcast %297 : vector<1x256xf32> to vector<8x256xf32>
    %299 = arith.mulf %298, %16 : vector<8x256xf32>
    %300 = arith.addf %295, %299 : vector<8x256xf32>
    %301 = arith.mulf %297, %19 : vector<1x256xf32>
    %302 = arith.addf %296, %301 : vector<1x256xf32>
    %303 = vector.extract_strided_slice %293 {offsets = [1, 0], sizes = [1, 256], strides = [1, 1]} : vector<8x256xf32> to vector<1x256xf32>
    %304 = vector.broadcast %303 : vector<1x256xf32> to vector<8x256xf32>
    %305 = arith.mulf %304, %45 : vector<8x256xf32>
    %306 = arith.addf %300, %305 : vector<8x256xf32>
    %307 = arith.mulf %303, %48 : vector<1x256xf32>
    %308 = arith.addf %302, %307 : vector<1x256xf32>
    %309 = vector.extract_strided_slice %293 {offsets = [2, 0], sizes = [1, 256], strides = [1, 1]} : vector<8x256xf32> to vector<1x256xf32>
    %310 = vector.broadcast %309 : vector<1x256xf32> to vector<8x256xf32>
    %311 = arith.mulf %310, %80 : vector<8x256xf32>
    %312 = arith.addf %306, %311 : vector<8x256xf32>
    %313 = arith.mulf %309, %83 : vector<1x256xf32>
    %314 = arith.addf %308, %313 : vector<1x256xf32>
    %315 = vector.extract_strided_slice %293 {offsets = [3, 0], sizes = [1, 256], strides = [1, 1]} : vector<8x256xf32> to vector<1x256xf32>
    %316 = vector.broadcast %315 : vector<1x256xf32> to vector<8x256xf32>
    %317 = arith.mulf %316, %121 : vector<8x256xf32>
    %318 = arith.addf %312, %317 : vector<8x256xf32>
    %319 = arith.mulf %315, %124 : vector<1x256xf32>
    %320 = arith.addf %314, %319 : vector<1x256xf32>
    %321 = vector.extract_strided_slice %293 {offsets = [4, 0], sizes = [1, 256], strides = [1, 1]} : vector<8x256xf32> to vector<1x256xf32>
    %322 = vector.broadcast %321 : vector<1x256xf32> to vector<8x256xf32>
    %323 = arith.mulf %322, %168 : vector<8x256xf32>
    %324 = arith.addf %318, %323 : vector<8x256xf32>
    %325 = arith.mulf %321, %171 : vector<1x256xf32>
    %326 = arith.addf %320, %325 : vector<1x256xf32>
    %327 = vector.extract_strided_slice %293 {offsets = [5, 0], sizes = [1, 256], strides = [1, 1]} : vector<8x256xf32> to vector<1x256xf32>
    %328 = vector.broadcast %327 : vector<1x256xf32> to vector<8x256xf32>
    %329 = arith.mulf %328, %221 : vector<8x256xf32>
    %330 = arith.addf %324, %329 : vector<8x256xf32>
    %331 = arith.mulf %327, %224 : vector<1x256xf32>
    %332 = arith.addf %326, %331 : vector<1x256xf32>
    %333 = vector.extract_strided_slice %293 {offsets = [6, 0], sizes = [1, 256], strides = [1, 1]} : vector<8x256xf32> to vector<1x256xf32>
    %334 = vector.broadcast %333 : vector<1x256xf32> to vector<8x256xf32>
    %335 = arith.mulf %334, %280 : vector<8x256xf32>
    %336 = arith.addf %330, %335 : vector<8x256xf32>
    %337 = arith.mulf %333, %283 : vector<1x256xf32>
    %338 = arith.addf %332, %337 : vector<1x256xf32>
    %339 = vector.extract_strided_slice %293 {offsets = [7, 0], sizes = [1, 256], strides = [1, 1]} : vector<8x256xf32> to vector<1x256xf32>
    %340 = vector.extract_strided_slice %294 {offsets = [7, 0], sizes = [1, 256], strides = [1, 1]} : vector<8x256xf32> to vector<1x256xf32>
    %cst_60 = arith.constant 1.000000e+00 : f32
    %341 = vector.broadcast %cst_60 : f32 to vector<1x256xf32>
    %342 = arith.divf %341, %339 : vector<1x256xf32>
    %343 = arith.subf %294, %336 : vector<8x256xf32>
    %344 = vector.broadcast %342 : vector<1x256xf32> to vector<8x256xf32>
    %345 = arith.mulf %343, %344 : vector<8x256xf32>
    %346 = vector.extract_strided_slice %2 {offsets = [7, 0], sizes = [1, 256], strides = [1, 1]} : vector<8x256xf32> to vector<1x256xf32>
    %347 = arith.subf %346, %338 : vector<1x256xf32>
    %348 = arith.mulf %347, %342 : vector<1x256xf32>
    %349 = arith.mulf %345, %345 : vector<8x256xf32>
    %cst_61 = arith.constant dense<0.000000e+00> : vector<256xf32>
    %350 = vector.multi_reduction <add>, %349, %cst_61 [0] : vector<8x256xf32> to vector<256xf32>
    %351 = vector.shape_cast %350 : vector<256xf32> to vector<1x256xf32>
    %352 = arith.addf %287, %351 : vector<1x256xf32>
    %353 = arith.mulf %348, %348 : vector<1x256xf32>
    %354 = arith.addf %289, %353 : vector<1x256xf32>
    %355 = arith.mulf %340, %342 : vector<1x256xf32>
    %356 = math.log %355 : vector<1x256xf32>
    %357 = arith.addf %292, %356 : vector<1x256xf32>
    %358 = arith.addf %352, %354 : vector<1x256xf32>
    %cst_62 = arith.constant 2.000000e+00 : f32
    %359 = vector.broadcast %cst_62 : f32 to vector<1x256xf32>
    %360 = arith.mulf %359, %357 : vector<1x256xf32>
    %361 = arith.subf %358, %360 : vector<1x256xf32>
    %cst_63 = arith.constant 8.000000e+00 : f32
    %362 = vector.broadcast %cst_63 : f32 to vector<1x256xf32>
    %363 = arith.subf %361, %362 : vector<1x256xf32>
    %cst_64 = arith.constant 5.000000e-01 : f32
    %364 = vector.broadcast %cst_64 : f32 to vector<1x256xf32>
    %365 = arith.mulf %364, %363 : vector<1x256xf32>
    %c0_65 = arith.constant 0 : index
    %c0_66 = arith.constant 0 : index
    %366 = vector.load %arg5[%c0_65, %c0_66] : memref<1x256xf32, #tpu.memory_space<vmem>>, vector<1x256xf32>
    tpu.vector_store %arg5[%c0_65, %c0_66], %365 {strides = array<i32>} : memref<1x256xf32, #tpu.memory_space<vmem>>, vector<1x256xf32>,
    return
  }
  func.func @transform_0(%arg0: i32) -> (i32, i32) {
    %c0_i32 = arith.constant 0 : i32
    %c0_i32_0 = arith.constant 0 : i32
    return %c0_i32, %arg0 : i32, i32
  }
  func.func @transform_1(%arg0: i32) -> (i32, i32) {
    %c0_i32 = arith.constant 0 : i32
    %c0_i32_0 = arith.constant 0 : i32
    return %c0_i32, %arg0 : i32, i32
  }
  func.func @transform_2(%arg0: i32) -> (i32, i32) {
    %c0_i32 = arith.constant 0 : i32
    %c0_i32_0 = arith.constant 0 : i32
    return %c0_i32, %arg0 : i32, i32
  }
  func.func @transform_3(%arg0: i32) -> (i32, i32) {
    %c0_i32 = arith.constant 0 : i32
    %c0_i32_0 = arith.constant 0 : i32
    return %c0_i32, %arg0 : i32, i32
  }
  func.func @transform_4(%arg0: i32) -> (i32, i32) {
    %c0_i32 = arith.constant 0 : i32
    %c0_i32_0 = arith.constant 0 : i32
    return %c0_i32, %arg0 : i32, i32
  }
}

</mosaic_0001>

<bundles_post_ra>
// kernel: custom-call.3
= control target key start
LH: loop header
LB: loop body
LE: loop exit
PB: predicated region body
PF: predicated region fallthrough
CT: control target
= control target key end

     0   :  { %s524_s6 = smov 0   ;;  %s526_s7 = smov 0   ;;  %s626_s0 = inlined_call_operand.vmem [shape: f32[4,8,8,8], index: 0, kind: input, shape index: {}]   ;;  %s627_s1 = inlined_call_operand.vmem [shape: f32[4,8,8,8], index: 1, kind: output, shape index: {}]  }
   0x1   :  { %s528_s8 = smov 0   ;;  %s530_s9 = smov 0  }
   0x2   :  { %s532_s10 = smov 0  }
   0x3 LB: > { %s388_s11 = sadd.s32 4294967295, %s511_s10   ;;  %s29_s12 = sadd.s32 1, %s503_s8  ;;  %s511_s10 = sphi %s532_s10, %s7_s10   ;;  %s507_s9 = sphi %s530_s9, %s631_s9   ;;  %s503_s8 = sphi %s528_s8, %s630_s8   ;;  %s499_s7 = sphi %s526_s7, %s629_s7   ;;  %s495_s6 = sphi %s524_s6, %s628_s6  }
   0x4   : > { %p31_p0 = scmp.ge.s32.totalorder %s29_s12, 8  ;;  %s33_s13 = sadd.s32 1, %s507_s9 }
   0x5   : > { %p390_p2 = scmp.ge.s32.totalorder %s511_s10, 32 }
   0x6   : > { %s633_s12 = smov (%p31_p0, %s29_s12), 0  ;;  %s635_s13 = smov (!%p31_p0, %s33_s13), %s507_s9 }
   0x7   : > { %p35_p1 = scmp.ge.s32.totalorder %s635_s13, 4  ;;  %47 = sbr.rel (%p390_p2) target bundleno = 15 (0xf), region = 16 }
   0x8   : > { %s49_s14 = sand.u32 (!%p390_p2), 1, %s511_s10   ;;  %s392_s15 = sshll.u32 (!%p390_p2), %s507_s9, 3 }
   0x9   : > { %s637_s13 = smov (%p35_p1, %s635_s13), 0  ;;  %s391_s16 = sshll.u32 (!%p390_p2), %s49_s14, 3 }
   0xa   : > { %s55_s17 = sadd.s32 (!%p390_p2), %s503_s8, %s392_s15  ;;  %s51_s22 = scalar_lea.vmem (!%p390_p2), [#allocation0], %s391_s16 }
   0xb   : > { %s393_s18 = sshll.u32 (!%p390_p2), %s55_s17, 3 }
   0xc   : > { %s57_s21 = scalar_lea.vmem (!%p390_p2), %s626_s0, %s393_s18 }
   0xd   : > { %v85_v0 = vld [vmem:[%s57_s21] sm:$0xff] (!%p390_p2) }
   0xe   : > { %86 = vst [vmem:[%s51_s22] sm:$0xff] %v85_v0 }
   0xf PF: > { %p394_p3 = scmp.ge.s32.totalorder %s511_s10, 1  ;;  %p91_p4 = scmp.lt.s32.totalorder %s511_s10, 33 }
  0x11   : > { %p92_p5 = pnand %p394_p3, %p91_p4 }
  0x12   : > { %s98_s23 = sand.u32 (!%p92_p5), 1, %s388_s11   ;;  %v513_v1 = vmov (!%p92_p5), 0.0   ;;  %vm110_vm0 = vcmask (!%p92_p5), 7168   ;;  %vm128_vm1 = vcmask (!%p92_p5), 15368   ;;  %vm145_vm2 = vcmask (!%p92_p5), 1047553   ;;  %s412_s27 = sshll.u32 (!%p92_p5), %s499_s7, 3 }
  0x13   : > { %95 = sbr.rel (%p92_p5) target bundleno = 1380 (0x564), region = 54  ;;  %s395_s24 = sshll.u32 (!%p92_p5), %s98_s23, 3  ;;  %vm146_vm3 = vmand (!%p92_p5), %vm128_vm1, %vm145_vm2  ;;  %vm150_vm4 = vcmask (!%p92_p5), 23568   ;;  %vm167_vm5 = vcmask (!%p92_p5), 1047554   ;;  %vm172_vm7 = vcmask (!%p92_p5), 31768   ;;  %vm189_vm8 = vcmask (!%p92_p5), 1047555  }
  0x14   : > { %s566_s25 = scalar_lea.vmem (!%p92_p5), [#allocation1], %s395_s24  ;;  %s570_s26 = scalar_lea.vmem (!%p92_p5), [#allocation0], %s395_s24  ;;  %vm168_vm6 = vmand (!%p92_p5), %vm150_vm4, %vm167_vm5  ;;  %vm194_vm10 = vcmask (!%p92_p5), 39968   ;;  %vm211_vm11 = vcmask (!%p92_p5), 1047556   ;;  %vm216_vm13 = vcmask (!%p92_p5), 48168   ;;  %vm233_vm14 = vcmask (!%p92_p5), 1047557  }
  0x15   : > { %109 = vst [vmem:[%s566_s25] sm:$0xff] (!%p92_p5), %v513_v1  ;;  %v112_v5 = vld [vmem:[%s570_s26] ss:$0 sm:$0xff] (!%p92_p5)  ;;  %v398_v17 = vld [vmem:[%s570_s26 + $0x1] ss:$0 sm:$0xff] (!%p92_p5)  ;;  %v400_v29 = vld [vmem:[%s570_s26 + $0x2] ss:$0 sm:$0xff] (!%p92_p5)  ;;  %s289_s28 = sadd.s32 (!%p92_p5), %s495_s6, %s412_s27 }
  0x16   : > { %v574_v9 = vld [vmem:[%s570_s26] sm:$0xff] (!%p92_p5)  ;;  %vm190_vm9 = vmand (!%p92_p5), %vm172_vm7, %vm189_vm8  ;;  %vm255_vm1 = vcmask (!%p92_p5), 1047558   ;;  %vm277_vm4 = vcmask (!%p92_p5), 1047559   ;;  %s413_s29 = sshll.u32 (!%p92_p5), %s289_s28, 3 }
  0x17   : > { %v402_v41 = vld [vmem:[%s570_s26 + $0x3] ss:$0 sm:$0xff] (!%p92_p5)  ;;  %v404_v53 = vld [vmem:[%s570_s26 + $0x4] ss:$0 sm:$0xff] (!%p92_p5)  ;;  %vm212_vm12 = vmand (!%p92_p5), %vm194_vm10, %vm211_vm11  ;;  %s291_s3 = scalar_lea.vmem (!%p92_p5), %s627_s1, %s413_s29 }
  0x18   : > { %v406_v1 = vld [vmem:[%s570_s26 + $0x5] ss:$0 sm:$0xff] (!%p92_p5)  ;;  %vm234_vm15 = vmand (!%p92_p5), %vm216_vm13, %vm233_vm14 }
  0x1c   : > { %v111_v2 = vld [vmem:[%s566_s25] ss:$0 sm:$0xff] }
  0x1d   : > { %v113_v3 = vmul.f32 %v111_v2, %v111_v2  ;;  %v120_v4 = vmul.f32 0.0, %v111_v2 }
  0x1f   : > { %114 = vadd.xlane.f32.xlu0 %v113_v3 }
  0x23   : > { %121 = vadd.xlane.f32.xlu0 %v120_v4 }
  0xac   : > { %v115_v6 = vpop.xlane.xlu0 %114 }
  0xad   : > { %v116_v7 = vsub.f32 %v112_v5, %v115_v6 }
  0xaf   : > { %457 = vrsqrt.f32 %v116_v7 }
  0xb0   : > { %v122_v8 = vpop.xlane.xlu0 %121 }
  0xb1   : > { %v123_v10 = vsub.f32 %v574_v9, %v122_v8 }
  0xb9   : > { %v458_v11 = vpop.eup %457 }
  0xba   : > { %v124_v12 = vmul.f32 %v458_v11, %v123_v10 }
  0xbc   : > { %v125_v13 = vsel %vm110_vm0, %v124_v12, 0.0  ;;  %vm238_vm0 = vcmask 56368  }
  0xbd   : > { %127 = vst [vmem:[%s566_s25] sm:$0xff] %v125_v13  ;;  %vm256_vm2 = vmand %vm238_vm0, %vm255_vm1 }
  0xc4   : > { %v397_v14 = vld [vmem:[%s566_s25 + $0x1] ss:$0 sm:$0xff] }
  0xc5   : > { %v133_v15 = vmul.f32 %v397_v14, %v397_v14  ;;  %v140_v16 = vmul.f32 %v397_v14, %v125_v13  ;;  %v408_v14 = vld [vmem:[%s570_s26 + $0x6] ss:$0 sm:$0xff] }
  0xc7   : > { %134 = vadd.xlane.f32.xlu1 %v133_v15 }
  0xcb   : > { %141 = vadd.xlane.f32.xlu1 %v140_v16 }
 0x154   : > { %v135_v18 = vpop.xlane.xlu1 %134 }
 0x155   : > { %v136_v19 = vsub.f32 %v398_v17, %v135_v18 }
 0x157   : > { %459 = vrsqrt.f32 %v136_v19 }
 0x158   : > { %v142_v20 = vpop.xlane.xlu1 %141 }
 0x159   : > { %v143_v21 = vsub.f32 %v574_v9, %v142_v20 }
 0x161   : > { %v460_v22 = vpop.eup %459 }
 0x162   : > { %v144_v23 = vmul.f32 %v460_v22, %v143_v21 }
 0x164   : > { %v147_v24 = vsel %vm146_vm3, %v144_v23, 0.0  ;;  %vm260_vm3 = vcmask 64568  }
 0x165   : > { %v148_v25 = vadd.f32 %v147_v24, %v125_v13  ;;  %vm278_vm5 = vmand %vm260_vm3, %vm277_vm4 }
 0x167   : > { %149 = vst [vmem:[%s566_s25] sm:$0xff] %v148_v25 }
 0x16e   : > { %v399_v26 = vld [vmem:[%s566_s25 + $0x2] ss:$0 sm:$0xff] }
 0x16f   : > { %v162_v27 = vmul.f32 %v399_v26, %v148_v25  ;;  %v155_v28 = vmul.f32 %v399_v26, %v399_v26  ;;  %v410_v26 = vld [vmem:[%s570_s26 + $0x7] ss:$0 sm:$0xff] }
 0x171   : > { %163 = vadd.xlane.f32.xlu1 %v162_v27  ;;  %156 = vadd.xlane.f32.xlu0 %v155_v28 }
 0x1fe   : > { %v157_v30 = vpop.xlane.xlu0 %156  ;;  %v164_v32 = vpop.xlane.xlu1 %163 }
 0x1ff   : > { %v158_v31 = vsub.f32 %v400_v29, %v157_v30  ;;  %v165_v33 = vsub.f32 %v574_v9, %v164_v32 }
 0x201   : > { %461 = vrsqrt.f32 %v158_v31 }
 0x20b   : > { %v462_v34 = vpop.eup %461 }
 0x20c   : > { %v166_v35 = vmul.f32 %v462_v34, %v165_v33 }
 0x20e   : > { %v169_v36 = vsel %vm168_vm6, %v166_v35, 0.0 }
 0x20f   : > { %v170_v37 = vadd.f32 %v169_v36, %v148_v25 }
 0x211   : > { %171 = vst [vmem:[%s566_s25] sm:$0xff] %v170_v37 }
 0x218   : > { %v401_v38 = vld [vmem:[%s566_s25 + $0x3] ss:$0 sm:$0xff] }
 0x219   : > { %v184_v39 = vmul.f32 %v401_v38, %v170_v37  ;;  %v177_v40 = vmul.f32 %v401_v38, %v401_v38 }
 0x21b   : > { %185 = vadd.xlane.f32.xlu1 %v184_v39  ;;  %178 = vadd.xlane.f32.xlu0 %v177_v40 }
 0x2a8   : > { %v179_v42 = vpop.xlane.xlu0 %178  ;;  %v186_v44 = vpop.xlane.xlu1 %185 }
 0x2a9   : > { %v180_v43 = vsub.f32 %v402_v41, %v179_v42  ;;  %v187_v45 = vsub.f32 %v574_v9, %v186_v44 }
 0x2ab   : > { %463 = vrsqrt.f32 %v180_v43 }
 0x2b5   : > { %v464_v46 = vpop.eup %463 }
 0x2b6   : > { %v188_v47 = vmul.f32 %v464_v46, %v187_v45 }
 0x2b8   : > { %v191_v48 = vsel %vm190_vm9, %v188_v47, 0.0 }
 0x2b9   : > { %v192_v49 = vadd.f32 %v191_v48, %v170_v37 }
 0x2bb   : > { %193 = vst [vmem:[%s566_s25] sm:$0xff] %v192_v49 }
 0x2c2   : > { %v403_v50 = vld [vmem:[%s566_s25 + $0x4] ss:$0 sm:$0xff] }
 0x2c3   : > { %v206_v51 = vmul.f32 %v403_v50, %v192_v49  ;;  %v199_v52 = vmul.f32 %v403_v50, %v403_v50 }
 0x2c5   : > { %207 = vadd.xlane.f32.xlu1 %v206_v51  ;;  %200 = vadd.xlane.f32.xlu0 %v199_v52 }
 0x352   : > { %v201_v54 = vpop.xlane.xlu0 %200  ;;  %v208_v56 = vpop.xlane.xlu1 %207 }
 0x353   : > { %v202_v55 = vsub.f32 %v404_v53, %v201_v54  ;;  %v209_v57 = vsub.f32 %v574_v9, %v208_v56 }
 0x355   : > { %465 = vrsqrt.f32 %v202_v55 }
 0x35f   : > { %v466_v58 = vpop.eup %465 }
 0x360   : > { %v210_v59 = vmul.f32 %v466_v58, %v209_v57 }
 0x362   : > { %v213_v60 = vsel %vm212_vm12, %v210_v59, 0.0 }
 0x363   : > { %v214_v61 = vadd.f32 %v213_v60, %v192_v49 }
 0x365   : > { %215 = vst [vmem:[%s566_s25] sm:$0xff] %v214_v61 }
 0x36c   : > { %v405_v62 = vld [vmem:[%s566_s25 + $0x5] ss:$0 sm:$0xff] }
 0x36d   : > { %v228_v63 = vmul.f32 %v405_v62, %v214_v61  ;;  %v221_v0 = vmul.f32 %v405_v62, %v405_v62 }
 0x36f   : > { %229 = vadd.xlane.f32.xlu1 %v228_v63  ;;  %222 = vadd.xlane.f32.xlu0 %v221_v0 }
 0x3fc   : > { %v223_v2 = vpop.xlane.xlu0 %222  ;;  %v230_v4 = vpop.xlane.xlu1 %229 }
 0x3fd   : > { %v224_v3 = vsub.f32 %v406_v1, %v223_v2  ;;  %v231_v5 = vsub.f32 %v574_v9, %v230_v4 }
 0x3ff   : > { %467 = vrsqrt.f32 %v224_v3 }
 0x409   : > { %v468_v6 = vpop.eup %467 }
 0x40a   : > { %v232_v7 = vmul.f32 %v468_v6, %v231_v5 }
 0x40c   : > { %v235_v8 = vsel %vm234_vm15, %v232_v7, 0.0 }
 0x40d   : > { %v236_v10 = vadd.f32 %v235_v8, %v214_v61 }
 0x40f   : > { %237 = vst [vmem:[%s566_s25] sm:$0xff] %v236_v10 }
 0x416   : > { %v407_v11 = vld [vmem:[%s566_s25 + $0x6] ss:$0 sm:$0xff] }
 0x417   : > { %v250_v12 = vmul.f32 %v407_v11, %v236_v10  ;;  %v243_v13 = vmul.f32 %v407_v11, %v407_v11 }
 0x419   : > { %251 = vadd.xlane.f32.xlu1 %v250_v12  ;;  %244 = vadd.xlane.f32.xlu0 %v243_v13 }
 0x4a6   : > { %v245_v15 = vpop.xlane.xlu0 %244  ;;  %v252_v17 = vpop.xlane.xlu1 %251 }
 0x4a7   : > { %v246_v16 = vsub.f32 %v408_v14, %v245_v15  ;;  %v253_v18 = vsub.f32 %v574_v9, %v252_v17 }
 0x4a9   : > { %469 = vrsqrt.f32 %v246_v16 }
 0x4b3   : > { %v470_v19 = vpop.eup %469 }
 0x4b4   : > { %v254_v20 = vmul.f32 %v470_v19, %v253_v18 }
 0x4b6   : > { %v257_v21 = vsel %vm256_vm2, %v254_v20, 0.0 }
 0x4b7   : > { %v258_v22 = vadd.f32 %v257_v21, %v236_v10 }
 0x4b9   : > { %259 = vst [vmem:[%s566_s25] sm:$0xff] %v258_v22 }
 0x4c0   : > { %v409_v23 = vld [vmem:[%s566_s25 + $0x7] ss:$0 sm:$0xff] }
 0x4c1   : > { %v272_v24 = vmul.f32 %v409_v23, %v258_v22  ;;  %v265_v25 = vmul.f32 %v409_v23, %v409_v23 }
 0x4c3   : > { %273 = vadd.xlane.f32.xlu1 %v272_v24  ;;  %266 = vadd.xlane.f32.xlu0 %v265_v25 }
 0x550   : > { %v267_v27 = vpop.xlane.xlu0 %266  ;;  %v274_v29 = vpop.xlane.xlu1 %273 }
 0x551   : > { %v268_v28 = vsub.f32 %v410_v26, %v267_v27  ;;  %v275_v30 = vsub.f32 %v574_v9, %v274_v29 }
 0x553   : > { %471 = vrsqrt.f32 %v268_v28 }
 0x55d   : > { %v472_v31 = vpop.eup %471 }
 0x55e   : > { %v276_v32 = vmul.f32 %v472_v31, %v275_v30 }
 0x560   : > { %v279_v33 = vsel %vm278_vm5, %v276_v32, 0.0 }
 0x561   : > { %v280_v34 = vadd.f32 %v279_v33, %v258_v22 }
 0x563   : > { %281 = vst [vmem:[%s566_s25] sm:$0xff] %v280_v34  ;;  %320 = vst [vmem:[%s291_s3] sm:$0xff] %v280_v34 }
 0x564 PF: > { %s7_s10 = sadd.s32 1, %s511_s10   ;;  %s628_s6 = smov %s503_s8 }
 0x565   : > { %p4_p6 = scmp.ge.s32.totalorder %s7_s10, 34   ;;  %s629_s7 = smov %s507_s9 }
 0x566   : > { %s630_s8 = smov %s633_s12  ;;  %s631_s9 = smov %s637_s13 }
 0x567   :  { %6 = sbr.rel (!%p4_p6) target bundleno = 3 (0x3), region = 132 }

// kernel: _lambda_.3
= control target key start
LH: loop header
LB: loop body
LE: loop exit
PB: predicated region body
PF: predicated region fallthrough
CT: control target
= control target key end

     0   :  { %v111_v0 = vld [vmem:[#allocation2 + $0x18] sm:$0xff]  ;;  %v110_v1 = vld [vmem:[#allocation2 + $0x10] sm:$0xff]  ;;  %vm112_vm0 = vcmask 64512   ;;  %v1049_v3 = vmov 0.0   ;;  %v109_v4 = vld [vmem:[#allocation2 + $0x8] sm:$0xff]  ;;  %s1162_s0 = inlined_call_operand.vmem [shape: f32[4,8,32], index: 0, kind: input, shape index: {}]   ;;  %s1163_s1 = inlined_call_operand.vmem [shape: f32[16,32], index: 1, kind: input, shape index: {}]   ;;  %s1164_s2 = inlined_call_operand.vmem [shape: f32[16,8], index: 2, kind: input, shape index: {}]   ;;  %s1165_s3 = inlined_call_operand.vmem [shape: f32[1,32], index: 3, kind: output, shape index: {}]  }
   0x1   :  { %v98_v2 = vld [vmem:[%s1164_s2] sm:$0xff]  ;;  %196 = vmatprep.subr.mxu1 %v111_v0  ;;  %260 = vmatprep.mubr.f32.mxu1 %v1049_v3  ;;  %v325_v6 = vld [vmem:[#allocation2 + $0x38] sm:$0xff]  ;;  %v323_v7 = vld [vmem:[#allocation2 + $0x28] sm:$0xff] }
   0x2   :  { %v43_v5 = vld [vmem:[%s1162_s0] sm:$0xff]  ;;  %197 = vmatpush1.msra.mxu1 %v110_v1  ;;  %119 = vmatprep.subr.mxu0 %v109_v4  ;;  %v324_v8 = vld [vmem:[#allocation2 + $0x30] sm:$0xff]  ;;  %v45_v9 = vld [vmem:[%s1162_s0 + $0x8] sm:$0xff] }
   0x3   :  { %1033 = vmatmul.mubr.msk.f32.vlgmr.msra.gmra.mrb[0].mxu1 %vm112_vm0, %v98_v2  ;;  %120 = vmatpush1.msra.mxu0 %v43_v5  ;;  %v99_v10 = vld [vmem:[%s1164_s2 + $0x8] sm:$0xff]  ;;  %v47_v11 = vld [vmem:[%s1162_s0 + $0x10] sm:$0xff]  ;;  %v49_v12 = vld [vmem:[%s1162_s0 + $0x18] sm:$0xff] }
   0x4   :  { %266 = vmatprep.mubr.f32.mxu1 %v1049_v3  ;;  %183 = vmatprep.mubr.f32.mxu0 %v1049_v3  ;;  %v532_v13 = vld [vmem:[#allocation2 + $0x58] sm:$0xff]  ;;  %v530_v14 = vld [vmem:[#allocation2 + $0x48] sm:$0xff]  ;;  %v531_v15 = vld [vmem:[#allocation2 + $0x50] sm:$0xff] }
   0x5   :  { %403 = vmatprep.subr.mxu1 %v325_v6  ;;  %1031 = vmatmul.mubr.msk.f32.vlgmr.msra.gmra.mrb[0].mxu0 %vm112_vm0, %v98_v2  ;;  %v739_v16 = vld [vmem:[#allocation2 + $0x78] sm:$0xff]  ;;  %v737_v17 = vld [vmem:[#allocation2 + $0x68] sm:$0xff]  ;;  %v738_v18 = vld [vmem:[#allocation2 + $0x70] sm:$0xff] }
   0x6   :  { %326 = vmatprep.subr.mxu0 %v323_v7  ;;  %404 = vmatpush1.msra.mxu1 %v324_v8  ;;  %v1108_v19 = vld [vmem:[%s1163_s1] sm:$0xff]  ;;  %v1113_v20 = vld [vmem:[%s1163_s1 + $0x8] sm:$0xff]  ;;  %v1115_v21 = vld [vmem:[#allocation3 + $0x10] sm:$0xff] }
   0x7   :  { %1034 = vmatmul.mubr.msk.f32.gmra.mrb[2].mxu1 %vm112_vm0, %v99_v10  ;;  %327 = vmatpush1.msra.mxu0 %v45_v9  ;;  %v1117_v23 = vld [vmem:[#allocation3 + $0x18] sm:$0xff]  ;;  %v1119_v25 = vld [vmem:[#allocation3 + $0x30] sm:$0xff]  ;;  %v1124_v29 = vld [vmem:[#allocation3 + $0x8] sm:$0xff] }
   0x8   :  { %467 = vmatprep.mubr.f32.mxu1 %v1049_v3  ;;  %189 = vmatprep.mubr.f32.mxu0 %v1049_v3  ;;  %v1122_v28 = vld [vmem:[#allocation3 + $0x38] sm:$0xff]  ;;  %v1129_v36 = vld [vmem:[#allocation3 + $0x28] sm:$0xff] }
   0x9   :  { %1032 = vmatmul.mubr.msk.f32.gmra.mrb[2].mxu0 %vm112_vm0, %v99_v10  ;;  %610 = vmatprep.subr.mxu1 %v532_v13 }
   0xa   :  { %390 = vmatprep.mubr.f32.mxu0 %v1049_v3  ;;  %533 = vmatprep.subr.mxu0 %v530_v14 }
   0xb   :  { %1037 = vmatmul.mubr.msk.f32.vlgmr.msra.gmra.mrb[4].mxu1 %vm112_vm0, %v98_v2 }
   0xc   :  { %473 = vmatprep.mubr.f32.mxu1 %v1049_v3  ;;  %611 = vmatpush1.msra.mxu1 %v531_v15 }
   0xd   :  { %1035 = vmatmul.mubr.msk.f32.vlgmr.msra.gmra.mrb[4].mxu0 %vm112_vm0, %v98_v2  ;;  %817 = vmatprep.subr.mxu1 %v739_v16 }
   0xe   :  { %534 = vmatpush1.msra.mxu0 %v47_v11  ;;  %396 = vmatprep.mubr.f32.mxu0 %v1049_v3 }
   0xf   :  { %1038 = vmatmul.mubr.msk.f32.gmra.mrb[6].mxu1 %vm112_vm0, %v99_v10  ;;  %740 = vmatprep.subr.mxu0 %v737_v17 }
  0x10   :  { %674 = vmatprep.mubr.f32.mxu1 %v1049_v3 }
  0x11   :  { %1036 = vmatmul.mubr.msk.f32.gmra.mrb[6].mxu0 %vm112_vm0, %v99_v10 }
  0x12   :  { %597 = vmatprep.mubr.f32.mxu0 %v1049_v3 }
  0x13   :  { %1041 = vmatmul.mubr.msk.f32.vlgmr.msra.gmra.mrb[8].mxu1 %vm112_vm0, %v98_v2 }
  0x14   :  { %680 = vmatprep.mubr.f32.mxu1 %v1049_v3  ;;  %818 = vmatpush1.msra.mxu1 %v738_v18 }
  0x15   :  { %1039 = vmatmul.mubr.msk.f32.vlgmr.msra.gmra.mrb[8].mxu0 %vm112_vm0, %v98_v2 }
  0x16   :  { %741 = vmatpush1.msra.mxu0 %v49_v12  ;;  %603 = vmatprep.mubr.f32.mxu0 %v1049_v3 }
  0x17   :  { %1042 = vmatmul.mubr.msk.f32.gmra.mrb[10].mxu1 %vm112_vm0, %v99_v10 }
  0x18   :  { %881 = vmatprep.mubr.f32.mxu1 %v1049_v3 }
  0x19   :  { %1040 = vmatmul.mubr.msk.f32.gmra.mrb[10].mxu0 %vm112_vm0, %v99_v10 }
  0x1a   :  { %804 = vmatprep.mubr.f32.mxu0 %v1049_v3 }
  0x1b   :  { %1045 = vmatmul.mubr.msk.f32.vlgmr.msra.gmra.mrb[12].mxu1 %vm112_vm0, %v98_v2 }
  0x1c   :  { %887 = vmatprep.mubr.f32.mxu1 %v1049_v3 }
  0x1d   :  { %1043 = vmatmul.mubr.msk.f32.vlgmr.msra.gmra.mrb[12].mxu0 %vm112_vm0, %v98_v2 }
  0x1e   :  { %810 = vmatprep.mubr.f32.mxu0 %v1049_v3 }
  0x1f   :  { %1046 = vmatmul.mubr.msk.f32.gmra.mrb[14].mxu1 %vm112_vm0, %v99_v10 }
  0x21   :  { %1044 = vmatmul.mubr.msk.f32.gmra.mrb[14].mxu0 %vm112_vm0, %v99_v10 }
  0xd6   :  { %v262_v22 = vpop.f32.mrb[0].mxu1 }
  0xd7   :  { %v264_v24 = vpop.f32.mrb[1].mxu1  ;;  %v275_v27 = vsub.f32 %v1115_v21, %v262_v22 }
  0xd8   :  { %v185_v26 = vpop.f32.mrb[0].mxu0  ;;  %v276_v31 = vsub.f32 %v1117_v23, %v264_v24 }
  0xd9   :  { %v187_v30 = vpop.f32.mrb[1].mxu0  ;;  %v273_v35 = vsub.f32 %v1108_v19, %v185_v26  ;;  %v283_v40 = vmul.f32 %v275_v27, %v275_v27 }
  0xda   :  { %v268_v32 = vpop.f32.mrb[2].mxu1  ;;  %v274_v38 = vsub.f32 %v1124_v29, %v187_v30  ;;  %v284_v44 = vmul.f32 %v276_v31, %v276_v31 }
  0xdb   :  { %v279_v33 = vsub.f32 %v1119_v25, %v268_v32  ;;  %v270_v34 = vpop.f32.mrb[3].mxu1  ;;  %v281_v49 = vmul.f32 %v273_v35, %v273_v35 }
  0xdc   :  { %v280_v37 = vsub.f32 %v1122_v28, %v270_v34  ;;  %v191_v39 = vpop.f32.mrb[2].mxu0  ;;  %v282_v54 = vmul.f32 %v274_v38, %v274_v38 }
  0xdd   :  { %v287_v41 = vmul.f32 %v279_v33, %v279_v33  ;;  %v277_v42 = vsub.f32 %v1113_v20, %v191_v39  ;;  %v193_v43 = vpop.f32.mrb[3].mxu0 }
  0xde   :  { %v288_v45 = vmul.f32 %v280_v37, %v280_v37  ;;  %v469_v46 = vpop.f32.mrb[4].mxu1  ;;  %v278_v47 = vsub.f32 %v1129_v36, %v193_v43 }
  0xdf   :  { %v303_v48 = vadd.f32 %v287_v41, %v283_v40  ;;  %v482_v50 = vsub.f32 %v1115_v21, %v469_v46  ;;  %v285_v51 = vmul.f32 %v277_v42, %v277_v42  ;;  %v471_v52 = vpop.f32.mrb[5].mxu1 }
  0xe0   :  { %v310_v53 = vadd.f32 %v288_v45, %v284_v44  ;;  %v483_v55 = vsub.f32 %v1117_v23, %v471_v52  ;;  %v286_v56 = vmul.f32 %v278_v47, %v278_v47  ;;  %v392_v57 = vpop.f32.mrb[4].mxu0 }
  0xe1   :  { %v304_v58 = vrot.slane %v303_v48, 4  ;;  %v289_v59 = vadd.f32 %v285_v51, %v281_v49  ;;  %v480_v60 = vsub.f32 %v1108_v19, %v392_v57  ;;  %v394_v61 = vpop.f32.mrb[5].mxu0  ;;  %v490_v63 = vmul.f32 %v482_v50, %v482_v50 }
  0xe2   :  { %v311_v62 = vrot.slane %v310_v53, 4  ;;  %v296_v0 = vadd.f32 %v286_v56, %v282_v54  ;;  %v475_v1 = vpop.f32.mrb[6].mxu1  ;;  %v481_v2 = vsub.f32 %v1124_v29, %v394_v61  ;;  %v491_v5 = vmul.f32 %v483_v55, %v483_v55 }
  0xe3   :  { %v305_v3 = vadd.f32 %v304_v58, %v303_v48  ;;  %v290_v4 = vrot.slane %v289_v59, 4  ;;  %v486_v6 = vsub.f32 %v1119_v25, %v475_v1  ;;  %v477_v7 = vpop.f32.mrb[7].mxu1  ;;  %v488_v11 = vmul.f32 %v480_v60, %v480_v60 }
  0xe4   :  { %v312_v8 = vadd.f32 %v311_v62, %v310_v53  ;;  %v297_v9 = vrot.slane %v296_v0, 4  ;;  %v487_v10 = vsub.f32 %v1122_v28, %v477_v7  ;;  %v398_v12 = vpop.f32.mrb[6].mxu0  ;;  %v489_v26 = vmul.f32 %v481_v2, %v481_v2 }
  0xe5   :  { %v306_v13 = vrot.slane %v305_v3, 2  ;;  %v291_v14 = vadd.f32 %v290_v4, %v289_v59  ;;  %v494_v15 = vmul.f32 %v486_v6, %v486_v6  ;;  %v484_v16 = vsub.f32 %v1113_v20, %v398_v12  ;;  %v400_v17 = vpop.f32.mrb[7].mxu0 }
  0xe6   :  { %v313_v18 = vrot.slane %v312_v8, 2  ;;  %v298_v22 = vadd.f32 %v297_v9, %v296_v0  ;;  %v495_v24 = vmul.f32 %v487_v10, %v487_v10  ;;  %v676_v27 = vpop.f32.mrb[8].mxu1  ;;  %v485_v44 = vsub.f32 %v1129_v36, %v400_v17 }
  0xe7   :  { %v307_v30 = vadd.f32 %v306_v13, %v305_v3  ;;  %v292_v31 = vrot.slane %v291_v14, 2  ;;  %v510_v32 = vadd.f32 %v494_v15, %v490_v63  ;;  %v689_v33 = vsub.f32 %v1115_v21, %v676_v27  ;;  %v678_v34 = vpop.f32.mrb[9].mxu1 }
  0xe8   :  { %v314_v35 = vadd.f32 %v313_v18, %v312_v8  ;;  %v299_v37 = vrot.slane %v298_v22, 2  ;;  %v517_v38 = vadd.f32 %v495_v24, %v491_v5  ;;  %v492_v39 = vmul.f32 %v484_v16, %v484_v16  ;;  %v599_v40 = vpop.f32.mrb[8].mxu0 }
  0xe9   :  { %v308_v41 = vrot.slane %v307_v30, 1  ;;  %v293_v42 = vadd.f32 %v292_v31, %v291_v14  ;;  %v511_v43 = vrot.slane %v510_v32, 4  ;;  %v601_v45 = vpop.f32.mrb[9].mxu0  ;;  %v697_v53 = vmul.f32 %v689_v33, %v689_v33 }
  0xea   :  { %v315_v46 = vrot.slane %v314_v35, 1  ;;  %v300_v47 = vadd.f32 %v299_v37, %v298_v22  ;;  %v518_v48 = vrot.slane %v517_v38, 4  ;;  %v496_v49 = vadd.f32 %v492_v39, %v488_v11  ;;  %v682_v50 = vpop.f32.mrb[10].mxu1 }
  0xeb   :  { %v294_v51 = vrot.slane %v293_v42, 1  ;;  %v512_v52 = vadd.f32 %v511_v43, %v510_v32  ;;  %v690_v54 = vsub.f32 %v1117_v23, %v678_v34  ;;  %v684_v55 = vpop.f32.mrb[11].mxu1  ;;  %v309_v56 = vadd.f32 %v308_v41, %v307_v30 }
  0xec   :  { %v316_v57 = vadd.f32 %v315_v46, %v314_v35  ;;  %v519_v58 = vadd.f32 %v518_v48, %v517_v38  ;;  %v497_v59 = vrot.slane %v496_v49, 4  ;;  %v605_v60 = vpop.f32.mrb[10].mxu0  ;;  %v301_v62 = vrot.slane %v300_v47, 1 }
  0xed   :  { %v295_v61 = vadd.f32 %v294_v51, %v293_v42  ;;  %v513_v63 = vrot.slane %v512_v52, 2  ;;  %v493_v0 = vmul.f32 %v485_v44, %v485_v44  ;;  %v607_v1 = vpop.f32.mrb[11].mxu0  ;;  %v698_v4 = vmul.f32 %v690_v54, %v690_v54 }
  0xee   :  { %v520_v2 = vrot.slane %v519_v58, 2  ;;  %v498_v3 = vadd.f32 %v497_v59, %v496_v49  ;;  %v693_v5 = vsub.f32 %v1119_v25, %v682_v50  ;;  %v883_v6 = vpop.f32.mrb[12].mxu1  ;;  %v694_v9 = vsub.f32 %v1122_v28, %v684_v55 }
  0xef   :  { %v514_v7 = vadd.f32 %v513_v63, %v512_v52  ;;  %v503_v8 = vadd.f32 %v493_v0, %v489_v26  ;;  %v687_v10 = vsub.f32 %v1108_v19, %v599_v40  ;;  %v885_v11 = vpop.f32.mrb[13].mxu1  ;;  %v688_v15 = vsub.f32 %v1124_v29, %v601_v45 }
  0xf0   :  { %v521_v12 = vadd.f32 %v520_v2, %v519_v58  ;;  %v499_v13 = vrot.slane %v498_v3, 2  ;;  %v701_v14 = vmul.f32 %v693_v5, %v693_v5  ;;  %v806_v16 = vpop.f32.mrb[12].mxu0  ;;  %v302_v17 = vadd.f32 %v301_v62, %v300_v47 }
  0xf1   :  { %v515_v18 = vrot.slane %v514_v7, 1  ;;  %v504_v22 = vrot.slane %v503_v8, 4  ;;  %v702_v24 = vmul.f32 %v694_v9, %v694_v9  ;;  %v808_v27 = vpop.f32.mrb[13].mxu0  ;;  %v695_v26 = vmul.f32 %v687_v10, %v687_v10 }
  0xf2   :  { %v522_v30 = vrot.slane %v521_v12, 1  ;;  %v500_v31 = vadd.f32 %v499_v13, %v498_v3  ;;  %v717_v32 = vadd.f32 %v701_v14, %v697_v53  ;;  %v889_v33 = vpop.f32.mrb[14].mxu1  ;;  %v696_v38 = vmul.f32 %v688_v15, %v688_v15 }
  0xf3   :  { %v516_v34 = vadd.f32 %v515_v18, %v514_v7  ;;  %v505_v35 = vadd.f32 %v504_v22, %v503_v8  ;;  %v724_v37 = vadd.f32 %v702_v24, %v698_v4  ;;  %v891_v39 = vpop.f32.mrb[15].mxu1  ;;  %v691_v43 = vsub.f32 %v1113_v20, %v605_v60 }
  0xf4   :  { %v523_v40 = vadd.f32 %v522_v30, %v521_v12  ;;  %v501_v41 = vrot.slane %v500_v31, 1  ;;  %v718_v42 = vrot.slane %v717_v32, 4  ;;  %v812_v44 = vpop.f32.mrb[14].mxu0  ;;  %v896_v48 = vsub.f32 %v1115_v21, %v883_v6 }
  0xf5   :  { %v526_v45 = vadd.f32 %v516_v34, %v309_v56  ;;  %v506_v46 = vrot.slane %v505_v35, 2  ;;  %v725_v47 = vrot.slane %v724_v37, 4  ;;  %v814_v49 = vpop.f32.mrb[15].mxu0  ;;  %v699_v53 = vmul.f32 %v691_v43, %v691_v43 }
  0xf6   :  { %v527_v50 = vadd.f32 %v523_v40, %v316_v57  ;;  %v502_v51 = vadd.f32 %v501_v41, %v500_v31  ;;  %v719_v52 = vadd.f32 %v718_v42, %v717_v32  ;;  %v897_v58 = vsub.f32 %v1117_v23, %v885_v11 }
  0xf7   :  { %v507_v54 = vadd.f32 %v506_v46, %v505_v35  ;;  %v726_v55 = vadd.f32 %v725_v47, %v724_v37  ;;  %v692_v59 = vsub.f32 %v1129_v36, %v607_v1  ;;  %v703_v60 = vadd.f32 %v699_v53, %v695_v26 }
  0xf8   :  { %v524_v62 = vadd.f32 %v502_v51, %v295_v61  ;;  %v720_v63 = vrot.slane %v719_v52, 2  ;;  %v900_v56 = vsub.f32 %v1119_v25, %v889_v33  ;;  %v904_v3 = vmul.f32 %v896_v48, %v896_v48 }
  0xf9   :  { %v508_v0 = vrot.slane %v507_v54, 1  ;;  %v727_v2 = vrot.slane %v726_v55, 2  ;;  %v700_v21 = vmul.f32 %v692_v59, %v692_v59  ;;  %v704_v57 = vrot.slane %v703_v60, 4 }
  0xfa   :  { %v721_v4 = vadd.f32 %v720_v63, %v719_v52  ;;  %v908_v5 = vmul.f32 %v900_v56, %v900_v56  ;;  %v901_v6 = vsub.f32 %v1122_v28, %v891_v39  ;;  %v905_v9 = vmul.f32 %v897_v58, %v897_v58 }
  0xfb   :  { %v509_v7 = vadd.f32 %v508_v0, %v507_v54  ;;  %v728_v8 = vadd.f32 %v727_v2, %v726_v55  ;;  %v710_v23 = vadd.f32 %v700_v21, %v696_v38  ;;  %v705_v1 = vadd.f32 %v704_v57, %v703_v60 }
  0xfc   :  { %v722_v10 = vrot.slane %v721_v4, 1  ;;  %v924_v61 = vadd.f32 %v908_v5, %v904_v3  ;;  %v909_v11 = vmul.f32 %v901_v6, %v901_v6  ;;  %v894_v14 = vsub.f32 %v1108_v19, %v806_v16 }
  0xfd   :  { %v525_v12 = vadd.f32 %v509_v7, %v302_v17  ;;  %v729_v13 = vrot.slane %v728_v8, 1  ;;  %v711_v25 = vrot.slane %v710_v23, 4  ;;  %v706_v18 = vrot.slane %v705_v1, 2 }
  0xfe   :  { %v723_v15 = vadd.f32 %v722_v10, %v721_v4  ;;  %v925_v22 = vrot.slane %v924_v61, 4  ;;  %v931_v24 = vadd.f32 %v909_v11, %v905_v9  ;;  %v895_v28 = vsub.f32 %v1124_v29, %v808_v27 }
  0xff   :  { %v730_v30 = vadd.f32 %v729_v13, %v728_v8  ;;  %v712_v31 = vadd.f32 %v711_v25, %v710_v23  ;;  %v898_v32 = vsub.f32 %v1113_v20, %v812_v44  ;;  %v707_v33 = vadd.f32 %v706_v18, %v705_v1 }
 0x100   :  { %v733_v26 = vadd.f32 %v723_v15, %v526_v45  ;;  %v926_v34 = vadd.f32 %v925_v22, %v924_v61  ;;  %v932_v35 = vrot.slane %v931_v24, 4  ;;  %v902_v38 = vmul.f32 %v894_v14, %v894_v14 }
 0x101   :  { %v734_v37 = vadd.f32 %v730_v30, %v527_v50  ;;  %v713_v17 = vrot.slane %v712_v31, 2  ;;  %v906_v39 = vmul.f32 %v898_v32, %v898_v32  ;;  %v708_v40 = vrot.slane %v707_v33, 1 }
 0x102   :  { %v927_v19 = vrot.slane %v926_v34, 2  ;;  %v933_v16 = vadd.f32 %v932_v35, %v931_v24  ;;  %v899_v41 = vsub.f32 %v1129_v36, %v814_v49  ;;  %v903_v43 = vmul.f32 %v895_v28, %v895_v28 }
 0x103   :  { %v714_v42 = vadd.f32 %v713_v17, %v712_v31  ;;  %v910_v46 = vadd.f32 %v906_v39, %v902_v38  ;;  %v709_v47 = vadd.f32 %v708_v40, %v707_v33  ;;  %v959_v4 = vlaneseq }
 0x104   :  { %v928_v29 = vadd.f32 %v927_v19, %v926_v34  ;;  %v934_v27 = vrot.slane %v933_v16, 2  ;;  %v907_v20 = vmul.f32 %v899_v41, %v899_v41  ;;  %v1050_v6 = vmov 1966171168  }
 0x105   :  { %v715_v44 = vrot.slane %v714_v42, 1  ;;  %v911_v45 = vrot.slane %v910_v46, 4  ;;  %v731_v48 = vadd.f32 %v709_v47, %v524_v62  ;;  %v957_v7 = vunpack.c.l.s4 %v1050_v6 }
 0x106   :  { %v929_v51 = vrot.slane %v928_v29, 1  ;;  %v935_v50 = vadd.f32 %v934_v27, %v933_v16  ;;  %v917_v52 = vadd.f32 %v907_v20, %v903_v43  ;;  %vm981_vm1 = vcmp.lt.s32.totalorder %v959_v4, 512 }
 0x107   :  { %v716_v53 = vadd.f32 %v715_v44, %v714_v42  ;;  %v912_v54 = vadd.f32 %v911_v45, %v910_v46  ;;  %v958_v11 = vunpack.c.0.s8 %v957_v7 }
 0x108   :  { %v930_v55 = vadd.f32 %v929_v51, %v928_v29  ;;  %v936_v58 = vrot.slane %v935_v50, 1  ;;  %v918_v59 = vrot.slane %v917_v52, 4 }
 0x109   :  { %v732_v63 = vadd.f32 %v716_v53, %v525_v12  ;;  %v913_v36 = vrot.slane %v912_v54, 2  ;;  %v960_v12 = vshrl.u32 %v959_v4, 7 }
 0x10a   :  { %v940_v49 = vadd.f32 %v930_v55, %v733_v26  ;;  %v937_v60 = vadd.f32 %v936_v58, %v935_v50  ;;  %v919_v56 = vadd.f32 %v918_v59, %v917_v52 }
 0x10b   :  { %v914_v0 = vadd.f32 %v913_v36, %v912_v54  ;;  %v961_v15 = vsub.s32 %v958_v11, %v960_v12 }
 0x10c   :  { %v944_v2 = vmul.f32 -0.5, %v940_v49  ;;  %v941_v3 = vadd.f32 %v937_v60, %v734_v37  ;;  %v920_v21 = vrot.slane %v919_v56, 2 }
 0x10d   :  { %v915_v57 = vrot.slane %v914_v0, 1 }
 0x10e   :  { %v948_v62 = vadd.f32 -3.6126616, %v944_v2  ;;  %v945_v5 = vmul.f32 -0.5, %v941_v3  ;;  %v921_v8 = vadd.f32 %v920_v21, %v919_v56 }
 0x10f   :  { %v916_v9 = vadd.f32 %v915_v57, %v914_v0 }
 0x110   :  { %v949_v23 = vadd.f32 -3.6126616, %v945_v5  ;;  %v922_v10 = vrot.slane %v921_v8, 1 }
 0x111   :  { %v938_v1 = vadd.f32 %v916_v9, %v731_v48 }
 0x112   :  { %v955_v61 = vcombine.low %v948_v62, %v949_v23  ;;  %v923_v13 = vadd.f32 %v922_v10, %v921_v8 }
 0x113   :  { %v942_v25 = vmul.f32 -0.5, %v938_v1 }
 0x114   :  { %v939_v14 = vadd.f32 %v923_v13, %v732_v63  ;;  %v969_v30 = vrot.slane %v955_v61, %v961_v15 }
 0x115   :  { %v946_v18 = vadd.f32 -3.6126616, %v942_v25 }
 0x116   :  { %v943_v22 = vmul.f32 -0.5, %v939_v14 }
 0x118   :  { %v947_v24 = vadd.f32 -3.6126616, %v943_v22 }
 0x11a   :  { %v954_v31 = vcombine.low %v946_v18, %v947_v24 }
 0x11c   :  { %v962_v28 = vrot.slane %v954_v31, %v961_v15 }
 0x11e   :  { %v970_v32 = vcombine.low %v962_v28, %v969_v30 }
 0x120   :  { %v977_v26 = vrot.slane %v970_v32, %v961_v15 }
 0x122   :  { %983 = vst.msk [vmem:[#allocation4] sm:$0xf] %vm981_vm1, %v977_v26 }
 0x129   :  { %v1001_v33 = vld [vmem:[#allocation4] sm:$0x1] }
 0x12a   :  { %1002 = vst [vmem:[%s1165_s3] sm:$0x1] %v1001_v33 }

// kernel: _lambda_.2
= control target key start
LH: loop header
LB: loop body
LE: loop exit
PB: predicated region body
PF: predicated region fallthrough
CT: control target
= control target key end

     0   :  { %v2225_v2 = vlaneseq  ;;  %v148_v20 = vld [vmem:[#allocation3 + $0x8] sm:$0xff]  ;;  %v196_v39 = vld [vmem:[#allocation3 + $0x18] sm:$0xff]  ;;  %s2220_s0 = inlined_call_operand.vmem [shape: f32[8,32], index: 0, kind: input, shape index: {}]   ;;  %s2221_s1 = inlined_call_operand.vmem [shape: f32[8,32], index: 1, kind: input, shape index: {}]   ;;  %s2222_s2 = inlined_call_operand.vmem [shape: f32[64,32], index: 2, kind: input, shape index: {}]   ;;  %s2223_s3 = inlined_call_operand.vmem [shape: f32[64,32], index: 3, kind: input, shape index: {}]   ;;  %s2224_s4 = inlined_call_operand.vmem [shape: f32[1,32], index: 4, kind: output, shape index: {}]  }
   0x1   :  { %v118_v0 = vld [vmem:[%s2223_s3] sm:$0xff]  ;;  %v120_v1 = vld [vmem:[%s2223_s3 + $0x8] sm:$0xff]  ;;  %v1444_v3 = vld [vmem:[%s2223_s3 + $0x10] sm:$0xff] }
   0x2   :  { %1342 = vrcp.f32 %v118_v0  ;;  %v1449_v4 = vld [vmem:[%s2223_s3 + $0x18] sm:$0xff]  ;;  %v1454_v5 = vld [vmem:[%s2223_s3 + $0x20] sm:$0xff]  ;;  %v1459_v6 = vld [vmem:[%s2223_s3 + $0x28] sm:$0xff]  ;;  %v1501_v16 = vshrl.u32 %v2225_v2, 7 }
   0x3   :  { %1344 = vrcp.f32 %v120_v1  ;;  %v1464_v7 = vld [vmem:[%s2223_s3 + $0x30] sm:$0xff]  ;;  %v141_v8 = vld [vmem:[%s2220_s0] sm:$0xff]  ;;  %v58_v11 = vld [vmem:[%s2222_s2 + $0x8] sm:$0xff] }
   0x4   :  { %2243 = vst [vmem:[#allocation5_spill] sm:$0xff] %v1464_v7  ;;  %v143_v9 = vld [vmem:[%s2221_s1] sm:$0xff]  ;;  %v1481_v12 = vld [vmem:[%s2223_s3 + $0x38] sm:$0xff]  ;;  %1346 = vrcp.f32 %v1444_v3  ;;  %v1488_v13 = vld [vmem:[%s2222_s2 + $0x10] sm:$0xff]  ;;  %v1521_v22 = vsub.s32 0, %v1501_v16  ;;  %v1535_v31 = vsub.s32 1, %v1501_v16 }
   0x5   :  { %v56_v10 = vld [vmem:[%s2222_s2] sm:$0xff]  ;;  %2244 = vst [vmem:[#allocation6_spill] sm:$0xff] %v1481_v12  ;;  %133 = vst [vmem:[#allocation3 + $0x70] sm:$0xff] %v1481_v12  ;;  %v1493_v14 = vld [vmem:[%s2222_s2 + $0x18] sm:$0xff]  ;;  %1348 = vrcp.f32 %v148_v20  ;;  %v1518_v21 = vsub.f32 %v141_v8, %v143_v9 }
   0x6   :  { %v1498_v15 = vld [vmem:[%s2222_s2 + $0x20] sm:$0xff]  ;;  %2245 = vst [vmem:[#allocation7_spill] sm:$0xff] %v1501_v16  ;;  %v1506_v17 = vld [vmem:[%s2222_s2 + $0x28] sm:$0xff]  ;;  %v1511_v18 = vld [vmem:[%s2222_s2 + $0x30] sm:$0xff]  ;;  %v202_v30 = vrot.slane %v120_v1, %v1521_v22  ;;  %v288_v33 = vrot.slane %v1444_v3, %v1521_v22  ;;  %v396_v34 = vrot.slane %v1449_v4, %v1521_v22 }
   0x7   :  { %2246 = vst [vmem:[#allocation8_spill] sm:$0xff] %v1506_v17  ;;  %2247 = vst [vmem:[#allocation9_spill] sm:$0xff] %v1511_v18  ;;  %v70_v19 = vld [vmem:[%s2222_s2 + $0x38] sm:$0xff]  ;;  %v142_v24 = vld [vmem:[%s2220_s0 + $0x8] sm:$0xff] }
   0x8   :  { %67 = vst [vmem:[#allocation2 + $0x50] sm:$0xff] %v1506_v17  ;;  %69 = vst [vmem:[#allocation2 + $0x60] sm:$0xff] %v1511_v18  ;;  %v144_v25 = vld [vmem:[%s2221_s1 + $0x8] sm:$0xff] }
   0x9   :  { %71 = vst [vmem:[#allocation2 + $0x70] sm:$0xff] %v70_v19  ;;  %v1544_v37 = vsub.f32 %v142_v24, %v144_v25  ;;  %v1580_v60 = vld [vmem:[#allocation2 + $0x8] sm:$0xff]  ;;  %v304_v24 = vrot.slane %v1444_v3, %v1535_v31 }
   0xb   :  { %2248 = vst [vmem:[#allocation10_spill] sm:$0xff] %v1544_v37 }
   0xc   :  { %v1343_v23 = vpop.eup %1342 }
   0xd   :  { %v1345_v26 = vpop.eup %1344  ;;  %v1530_v27 = vmul.f32 %v1343_v23, %v1518_v21  ;;  %v158_v28 = vrot.slane %v1343_v23, %v1521_v22  ;;  %v187_v29 = vmul.f32 %v1343_v23, %v56_v10 }
   0xe   :  { %v267_v32 = vmul.f32 %v1345_v26, %v58_v11  ;;  %v1541_v35 = vpop.eup %1346  ;;  %v224_v45 = vrot.slane %v1345_v26, %v1535_v31 }
   0xf   :  { %v211_v36 = vmul.f32 %v1530_v27, %v120_v1  ;;  %v1546_v38 = vmul.f32 %v158_v28, %v56_v10  ;;  %1350 = vlog2.f32 %v187_v29  ;;  %v375_v40 = vmul.f32 %v1541_v35, %v1488_v13  ;;  %v1553_v44 = vpop.eup %1348 }
  0x10   :  { %1352 = vlog2.f32 %v267_v32  ;;  %v1563_v49 = vmul.f32 %v1553_v44, %v1544_v37  ;;  %v162_v54 = vrot.slane %v1553_v44, %v1521_v22  ;;  %v297_v57 = vmul.f32 %v1530_v27, %v1444_v3 }
  0x11   :  { %v233_v41 = vrot.slane %v211_v36, 7  ;;  %v167_v42 = vmul.f32 %v1546_v38, %v1546_v38  ;;  %v207_v43 = vmul.f32 %v202_v30, %v1546_v38  ;;  %1354 = vrcp.f32 %v196_v39 }
  0x12   :  { %v293_v46 = vmul.f32 %v288_v33, %v1546_v38  ;;  %v1558_v47 = vmul.f32 %v396_v34, %v1546_v38  ;;  %v212_v55 = vmul.f32 %v196_v39, %v1563_v49  ;;  %v206_v1 = vrot.slane %v196_v39, %v1521_v22  ;;  %v282_v33 = vld [vmem:[#allocation3 + $0x28] sm:$0xff] }
  0x13   :  { %v237_v48 = vsub.f32 %v1518_v21, %v233_v41  ;;  %v169_v50 = vrot.slane %v167_v42, 4  ;;  %v219_v51 = vsub.f32 %v58_v11, %v207_v43  ;;  %v1586_v9 = vmul.f32 %v162_v54, %v1580_v60 }
  0x14   :  { %v234_v62 = vrot.slane %v212_v55, 7  ;;  %1356 = vlog2.f32 %v375_v40  ;;  %v1594_v28 = vsub.s32 2, %v1501_v16 }
  0x15   :  { %v1565_v52 = vmul.f32 %v1345_v26, %v237_v48  ;;  %v170_v53 = vadd.f32 %v169_v50, %v167_v42  ;;  %v1570_v56 = vmul.f32 %v224_v45, %v219_v51  ;;  %1358 = vrcp.f32 %v1449_v4 }
  0x16   :  { %v238_v23 = vsub.f32 %v1544_v37, %v234_v62  ;;  %v208_v36 = vmul.f32 %v206_v1, %v1586_v9  ;;  %v1607_v45 = vsub.s32 3, %v1501_v16  ;;  %v183_v48 = vmul.f32 %v1530_v27, %v1530_v27 }
  0x17   :  { %v313_v58 = vmul.f32 %v1565_v52, %v1444_v3  ;;  %v1578_v59 = vmul.f32 %v1565_v52, %v1449_v4  ;;  %v171_v61 = vrot.slane %v170_v53, 2  ;;  %v241_v63 = vmul.f32 %v1570_v56, %v1570_v56  ;;  %v1600_v3 = vld [vmem:[#allocation2 + $0x18] sm:$0xff] }
  0x18   :  { %v257_v40 = vmul.f32 %v1565_v52, %v1565_v52  ;;  %v309_v43 = vmul.f32 %v304_v24, %v1570_v56  ;;  %1360 = vrcp.f32 %v282_v33  ;;  %v332_v51 = vrot.slane %v1541_v35, %v1594_v28 }
  0x19   :  { %v317_v0 = vrot.slane %v313_v58, 1  ;;  %v1351_v8 = vpop.eup %1350  ;;  %v172_v10 = vadd.f32 %v171_v61, %v170_v53  ;;  %v243_v11 = vrot.slane %v241_v63, 4  ;;  %v220_v61 = vsub.f32 %v1600_v3, %v208_v36 }
  0x1a   :  { %v1353_v19 = vpop.eup %1352  ;;  %v190_v30 = vmul.f32 0.6931472, %v1351_v8  ;;  %1362 = vrcp.f32 %v1454_v5 }
  0x1b   :  { %v321_v20 = vadd.f32 %v317_v0, %v297_v57  ;;  %v1591_v25 = vpop.eup %1354  ;;  %v244_v26 = vadd.f32 %v243_v11, %v241_v63  ;;  %v270_v32 = vmul.f32 0.6931472, %v1353_v19  ;;  %v173_v34 = vrot.slane %v172_v10, 1 }
  0x1c   :  { %v1603_v41 = vmul.f32 %v1591_v25, %v238_v23  ;;  %v228_v54 = vrot.slane %v1591_v25, %v1535_v31  ;;  %v311_v57 = vadd.f32 %v309_v43, %v293_v46  ;;  %v261_v63 = vrot.slane %v257_v40, 1 }
  0x1d   :  { %v341_v29 = vrot.slane %v321_v20, 6  ;;  %v245_v39 = vrot.slane %v244_v26, 2  ;;  %v275_v42 = vrot.slane %v270_v32, 1  ;;  %v174_v58 = vadd.f32 %v173_v34, %v172_v10 }
  0x1e   :  { %v298_v0 = vmul.f32 %v282_v33, %v1563_v49  ;;  %v314_v1 = vmul.f32 %v282_v33, %v1603_v41  ;;  %v327_v8 = vsub.f32 %v1488_v13, %v311_v57  ;;  %v1357_v11 = vpop.eup %1356  ;;  %v412_v20 = vrot.slane %v1449_v4, %v1535_v31 }
  0x1f   :  { %v246_v50 = vadd.f32 %v245_v39, %v244_v26  ;;  %v345_v53 = vsub.f32 %v1518_v21, %v341_v29  ;;  %v279_v55 = vadd.f32 %v275_v42, %v190_v30  ;;  %v1624_v46 = vsub.s32 4, %v1501_v16  ;;  %v1640_v36 = vpop.eup %1358 }
  0x20   :  { %v1627_v10 = vsub.s32 5, %v1501_v16  ;;  %v292_v23 = vrot.slane %v282_v33, %v1521_v22  ;;  %v318_v24 = vrot.slane %v314_v1, 1  ;;  %v1630_v26 = vmul.f32 %v332_v51, %v327_v8 }
  0x21   :  { %v247_v62 = vrot.slane %v246_v50, 1  ;;  %v1633_v13 = vmul.f32 %v1541_v35, %v345_v53  ;;  %v1635_v29 = vmul.f32 %v228_v54, %v220_v61  ;;  %v265_v32 = vadd.f32 %v261_v63, %v183_v48  ;;  %v1691_v35 = vld [vmem:[#allocation2 + $0x28] sm:$0xff] }
  0x22   :  { %2249 = vst [vmem:[#allocation11_spill] sm:$0xff] %v1627_v10  ;;  %v308_v34 = vrot.slane %v282_v33, %v1535_v31  ;;  %v322_v39 = vadd.f32 %v318_v24, %v298_v0  ;;  %v349_v40 = vmul.f32 %v1630_v26, %v1630_v26  ;;  %v378_v43 = vmul.f32 0.6931472, %v1357_v11  ;;  %v1656_v61 = vpop.eup %1360 }
  0x23   :  { %v248_v19 = vadd.f32 %v247_v62, %v246_v50  ;;  %v365_v42 = vmul.f32 %v1633_v13, %v1633_v13  ;;  %v1646_v50 = vld [vmem:[#allocation3 + $0x38] sm:$0xff]  ;;  %v434_v48 = vrot.slane %v1449_v4, %v1594_v28  ;;  %v405_v62 = vmul.f32 %v1530_v27, %v1449_v4 }
  0x24   :  { %v342_v53 = vrot.slane %v322_v39, 6  ;;  %v351_v54 = vrot.slane %v349_v40, 4  ;;  %v168_v63 = vmul.f32 %v1586_v9, %v1586_v9  ;;  %v294_v0 = vmul.f32 %v292_v23, %v1586_v9  ;;  %v1675_v23 = vpop.eup %1362 }
  0x25   :  { %v1637_v30 = vadd.f32 %v248_v19, %v174_v58  ;;  %v369_v57 = vrot.slane %v365_v42, 2  ;;  %v383_v58 = vrot.slane %v378_v43, 2  ;;  %v310_v1 = vmul.f32 %v308_v34, %v1635_v29 }
  0x26   :  { %v346_v8 = vsub.f32 %v1544_v37, %v342_v53  ;;  %v352_v11 = vadd.f32 %v351_v54, %v349_v40  ;;  %v417_v42 = vmul.f32 %v412_v20, %v1570_v56  ;;  %1364 = vrcp.f32 %v1646_v50 }
  0x27   :  { %v1665_v19 = vadd.f32 %v369_v57, %v265_v32  ;;  %v1667_v24 = vadd.f32 %v383_v58, %v279_v55  ;;  %v422_v55 = vmul.f32 %v1646_v50, %v1603_v41  ;;  %v425_v32 = vrot.slane %v1578_v59, 1  ;;  %v1687_v58 = vld [vmem:[#allocation3 + $0x48] sm:$0xff] }
  0x28   :  { %v1678_v34 = vmul.f32 %v1656_v61, %v346_v8  ;;  %v353_v40 = vrot.slane %v352_v11, 2  ;;  %v175_v53 = vrot.slane %v168_v63, 4  ;;  %v268_v20 = vmul.f32 %v1591_v25, %v1600_v3 }
  0x29   :  { %v419_v54 = vadd.f32 %v417_v42, %v1558_v47  ;;  %v439_v57 = vmul.f32 %v434_v48, %v1630_v26  ;;  %v312_v2 = vadd.f32 %v310_v1, %v294_v0  ;;  %v429_v8 = vadd.f32 %v425_v32, %v405_v62 }
  0x2a   :  { %v354_v43 = vadd.f32 %v353_v40, %v352_v11  ;;  %v406_v59 = vmul.f32 %v1646_v50, %v1563_v49  ;;  %v426_v51 = vrot.slane %v422_v55, 1  ;;  %v443_v47 = vmul.f32 %v1633_v13, %v1449_v4 }
  0x2b   :  { %v441_v33 = vadd.f32 %v439_v57, %v419_v54  ;;  %v242_v25 = vmul.f32 %v1635_v29, %v1635_v29  ;;  %v444_v48 = vmul.f32 %v1646_v50, %v1678_v34  ;;  %v462_v62 = vrot.slane %v1640_v36, %v1607_v45 }
  0x2c   :  { %v355_v3 = vrot.slane %v354_v43, 1  ;;  %v176_v0 = vadd.f32 %v175_v53, %v168_v63  ;;  %1366 = vlog2.f32 %v268_v20  ;;  %v447_v1 = vrot.slane %v443_v47, 2 }
  0x2d   :  { %v457_v11 = vsub.f32 %v1493_v14, %v441_v33  ;;  %v328_v42 = vsub.f32 %v1691_v35, %v312_v2  ;;  %v336_v4 = vrot.slane %v1656_v61, %v1594_v28  ;;  %v430_v32 = vadd.f32 %v426_v51, %v406_v59 }
  0x2e   :  { %v356_v40 = vadd.f32 %v355_v3, %v354_v43  ;;  %v448_v54 = vrot.slane %v444_v48, 2  ;;  %v451_v57 = vadd.f32 %v447_v1, %v429_v8  ;;  %v564_v39 = vrot.slane %v1454_v5, %v1594_v28 }
  0x2f   :  { %v249_v63 = vrot.slane %v242_v25, 4  ;;  %v1714_v33 = vmul.f32 %v462_v62, %v457_v11  ;;  %v177_v43 = vrot.slane %v176_v0, 2  ;;  %v505_v51 = vmul.f32 %v1640_v36, %v1493_v14 }
  0x30   :  { %v1712_v53 = vadd.f32 %v356_v40, %v1637_v30  ;;  %v1718_v20 = vpop.eup %1364  ;;  %v471_v47 = vrot.slane %v451_v57, 5  ;;  %v586_v8 = vrot.slane %v1454_v5, %v1607_v45  ;;  %v188_v59 = vmul.f32 %v1553_v44, %v1580_v60 }
  0x31   :  { %2250 = vst [vmem:[#allocation12_spill] sm:$0xff] %v1714_v33  ;;  %v1726_v30 = vmul.f32 %v336_v4, %v328_v42  ;;  %v479_v3 = vmul.f32 %v1714_v33, %v1714_v33  ;;  %v452_v62 = vadd.f32 %v448_v54, %v430_v32  ;;  %1368 = vlog2.f32 %v505_v51 }
  0x32   :  { %v475_v1 = vsub.f32 %v1518_v21, %v471_v47  ;;  %v2251_v14 = vrot.slane %v1454_v5, %v1521_v22  ;;  %v250_v40 = vadd.f32 %v249_v63, %v242_v25  ;;  %v1739_v44 = vmul.f32 %v1603_v41, %v1603_v41 }
  0x33   :  { %v481_v60 = vrot.slane %v479_v3, 4  ;;  %1370 = vrcp.f32 %v1687_v58  ;;  %v1742_v42 = vadd.f32 %v177_v43, %v176_v0  ;;  %v350_v4 = vmul.f32 %v1726_v30, %v1726_v30 }
  0x34   :  { %v531_v11 = vmul.f32 %v2251_v14, %v1546_v38  ;;  %v1747_v32 = vmul.f32 %v1640_v36, %v475_v1  ;;  %v1753_v25 = vmul.f32 %v1563_v49, %v1563_v49  ;;  %1372 = vlog2.f32 %v188_v59 }
  0x35   :  { %v482_v57 = vadd.f32 %v481_v60, %v479_v3  ;;  %v2253_v0 = vrot.slane %v1454_v5, %v1535_v31  ;;  %v472_v47 = vrot.slane %v452_v62, 5  ;;  %v535_v51 = vmul.f32 %v1530_v27, %v1454_v5 }
  0x36   :  { %2252 = vst [vmem:[#allocation13_spill] sm:$0xff] %v1747_v32  ;;  %v1367_v43 = vpop.eup %1366  ;;  %v495_v36 = vmul.f32 %v1747_v32, %v1747_v32  ;;  %v551_v1 = vmul.f32 %v1565_v52, %v1454_v5  ;;  %v251_v14 = vrot.slane %v250_v40, 2  ;;  %v262_v59 = vrot.slane %v1739_v44, 1 }
  0x37   :  { %v547_v63 = vmul.f32 %v2253_v0, %v1570_v56  ;;  %v483_v3 = vrot.slane %v482_v57, 2  ;;  %v179_v48 = vrot.slane %v1742_v42, 1  ;;  %v357_v2 = vrot.slane %v350_v4, 4 }
  0x38   :  { %v499_v0 = vrot.slane %v495_v36, 3  ;;  %v555_v55 = vrot.slane %v551_v1, 1  ;;  %v1767_v62 = vmul.f32 0.6931472, %v1367_v43  ;;  %v376_v54 = vmul.f32 %v1656_v61, %v1691_v35 }
  0x39   :  { %v549_v60 = vadd.f32 %v547_v63, %v531_v11  ;;  %v484_v18 = vadd.f32 %v483_v3, %v482_v57  ;;  %v569_v16 = vmul.f32 %v564_v39, %v1630_v26  ;;  %v476_v12 = vsub.f32 %v1544_v37, %v472_v47 }
  0x3a   :  { %v1774_v10 = vadd.f32 %v499_v0, %v1665_v19  ;;  %v552_v11 = vmul.f32 %v1687_v58, %v1603_v41  ;;  %v559_v44 = vadd.f32 %v555_v55, %v535_v51  ;;  %v252_v63 = vadd.f32 %v251_v14, %v250_v40 }
  0x3b   :  { %v2254_v43 = vrot.slane %v1646_v50, %v1521_v22  ;;  %v485_v1 = vrot.slane %v484_v18, 1  ;;  %v571_v35 = vadd.f32 %v569_v16, %v549_v60  ;;  %v1369_v61 = vpop.eup %1368  ;;  %v358_v57 = vadd.f32 %v357_v2, %v350_v4 }
  0x3c   :  { %v2255_v39 = vrot.slane %v1646_v50, %v1535_v31  ;;  %v573_v47 = vmul.f32 %v1633_v13, %v1454_v5  ;;  %v591_v55 = vmul.f32 %v586_v8, %v1714_v33  ;;  %v508_v14 = vmul.f32 0.6931472, %v1369_v61 }
  0x3d   :  { %v402_v36 = vmul.f32 %v2254_v43, %v1586_v9  ;;  %v1789_v40 = vpop.eup %1370  ;;  %v486_v51 = vadd.f32 %v485_v1, %v484_v18  ;;  %v536_v3 = vmul.f32 %v1687_v58, %v1563_v49  ;;  %v595_v16 = vmul.f32 %v1747_v32, %v1454_v5 }
  0x3e   :  { %v418_v19 = vmul.f32 %v2255_v39, %v1635_v29  ;;  %2256 = vst [vmem:[#allocation14_spill] sm:$0xff] %v1789_v40  ;;  %v1796_v2 = vmul.f32 %v1718_v20, %v476_v12  ;;  %v556_v4 = vrot.slane %v552_v11, 1  ;;  %v574_v60 = vmul.f32 %v1687_v58, %v1678_v34  ;;  %v1373_v43 = vpop.eup %1372 }
  0x3f   :  { %v577_v0 = vrot.slane %v573_v47, 2  ;;  %v253_v8 = vrot.slane %v252_v63, 1  ;;  %v1801_v39 = vadd.f32 %v486_v51, %v1712_v53  ;;  %v513_v18 = vrot.slane %v508_v14, 3 }
  0x40   :  { %v593_v1 = vadd.f32 %v591_v55, %v571_v35  ;;  %1374 = vlog2.f32 %v376_v54  ;;  %v420_v61 = vadd.f32 %v418_v19, %v402_v36  ;;  %v2257_v5 = vrot.slane %v1646_v50, %v1594_v28 }
  0x41   :  { %v581_v17 = vadd.f32 %v577_v0, %v559_v44  ;;  %v359_v11 = vrot.slane %v358_v57, 2  ;;  %v1808_v7 = vadd.f32 %v513_v18, %v1667_v24  ;;  %v599_v47 = vrot.slane %v595_v16, 3 }
  0x42   :  { %v440_v12 = vmul.f32 %v2257_v5, %v1726_v30  ;;  %v609_v40 = vsub.f32 %v1498_v15, %v593_v1  ;;  %v560_v32 = vadd.f32 %v556_v4, %v536_v3  ;;  %v578_v53 = vrot.slane %v574_v60, 2  ;;  %v392_v4 = vld [vmem:[#allocation2 + $0x38] sm:$0xff] }
  0x43   :  { %v596_v35 = vmul.f32 %v1687_v58, %v1796_v2  ;;  %v614_v54 = vrot.slane %v1675_v23, %v1624_v46  ;;  %v192_v36 = vmul.f32 0.6931472, %v1373_v43  ;;  %v366_v50 = vmul.f32 %v1678_v34, %v1678_v34 }
  0x44   :  { %v603_v44 = vadd.f32 %v599_v47, %v581_v17  ;;  %v657_v24 = vmul.f32 %v1675_v23, %v1498_v15  ;;  %v180_v19 = vadd.f32 %v179_v48, %v1742_v42  ;;  %v266_v55 = vadd.f32 %v262_v59, %v1753_v25 }
  0x45   :  { %v442_v51 = vadd.f32 %v440_v12, %v420_v61  ;;  %v1821_v14 = vmul.f32 %v614_v54, %v609_v40  ;;  %v254_v3 = vadd.f32 %v253_v8, %v252_v63  ;;  %v276_v16 = vrot.slane %v1767_v62, 1 }
  0x46   :  { %v623_v60 = vrot.slane %v603_v44, 4  ;;  %1376 = vlog2.f32 %v657_v24  ;;  %v360_v0 = vadd.f32 %v359_v11, %v358_v57  ;;  %v582_v43 = vadd.f32 %v578_v53, %v560_v32 }
  0x47   :  { %v600_v18 = vrot.slane %v596_v35, 3  ;;  %v631_v17 = vmul.f32 %v1821_v14, %v1821_v14  ;;  %v370_v15 = vrot.slane %v366_v50, 2  ;;  %v2258_v42 = vrot.slane %v1459_v6, %v1521_v22 }
  0x48   :  { %v627_v48 = vsub.f32 %v1518_v21, %v623_v60  ;;  %v694_v59 = vrot.slane %v1459_v6, %v1535_v31  ;;  %v458_v62 = vsub.f32 %v392_v4, %v442_v51  ;;  %v466_v63 = vrot.slane %v1718_v20, %v1607_v45 }
  0x49   :  { %v683_v25 = vmul.f32 %v2258_v42, %v1546_v38  ;;  %v633_v32 = vrot.slane %v631_v17, 4  ;;  %v703_v57 = vmul.f32 %v1565_v52, %v1459_v6  ;;  %v2259_v40 = vrot.slane %v1687_v58, %v1521_v22 }
  0x4a   :  { %v2260_v1 = vrot.slane %v1687_v58, %v1535_v31  ;;  %v1846_v5 = vmul.f32 %v1675_v23, %v627_v48  ;;  %v699_v12 = vmul.f32 %v694_v59, %v1570_v56  ;;  %v1375_v11 = vpop.eup %1374  ;;  %v1849_v47 = vadd.f32 %v276_v16, %v192_v36 }
  0x4b   :  { %v532_v8 = vmul.f32 %v2259_v40, %v1586_v9  ;;  %v361_v53 = vrot.slane %v360_v0, 1  ;;  %v604_v35 = vadd.f32 %v600_v18, %v582_v43  ;;  %v634_v54 = vadd.f32 %v633_v32, %v631_v17  ;;  %v1865_v17 = vld [vmem:[#allocation3 + $0x58] sm:$0xff] }
  0x4c   :  { %v548_v61 = vmul.f32 %v2260_v1, %v1635_v29  ;;  %v647_v50 = vmul.f32 %v1846_v5, %v1846_v5  ;;  %v687_v44 = vmul.f32 %v1530_v27, %v1459_v6  ;;  %v701_v24 = vadd.f32 %v699_v12, %v683_v25 }
  0x4d   :  { %v707_v51 = vrot.slane %v703_v57, 1  ;;  %v1855_v60 = vadd.f32 %v254_v3, %v180_v19  ;;  %v1857_v23 = vadd.f32 %v370_v15, %v266_v55  ;;  %v1859_v48 = vmul.f32 %v466_v63, %v458_v62 }
  0x4e   :  { %v635_v42 = vrot.slane %v634_v54, 2  ;;  %v550_v36 = vadd.f32 %v548_v61, %v532_v8  ;;  %v2263_v16 = vrot.slane %v1687_v58, %v1594_v28  ;;  %v651_v18 = vrot.slane %v647_v50, 4 }
  0x4f   :  { %2261 = vst [vmem:[#allocation15_spill] sm:$0xff] %v1855_v60  ;;  %2262 = vst [vmem:[#allocation16_spill] sm:$0xff] %v1857_v23  ;;  %v716_v25 = vrot.slane %v1459_v6, %v1594_v28  ;;  %v1869_v59 = vadd.f32 %v361_v53, %v360_v0  ;;  %v380_v19 = vmul.f32 0.6931472, %v1375_v11  ;;  %v725_v3 = vmul.f32 %v1633_v13, %v1459_v6 }
  0x50   :  { %v570_v43 = vmul.f32 %v2263_v16, %v1726_v30  ;;  %v636_v55 = vadd.f32 %v635_v42, %v634_v54  ;;  %v1377_v15 = vpop.eup %1376  ;;  %v624_v62 = vrot.slane %v604_v35, 4  ;;  %v1874_v63 = vadd.f32 %v651_v18, %v1774_v10 }
  0x51   :  { %2264 = vst [vmem:[#allocation17_spill] sm:$0xff] %v1869_v59  ;;  %v711_v32 = vadd.f32 %v707_v51, %v687_v44  ;;  %v721_v57 = vmul.f32 %v716_v25, %v1630_v26  ;;  %v506_v40 = vmul.f32 %v1718_v20, %v392_v4  ;;  %v660_v1 = vmul.f32 0.6931472, %v1377_v15  ;;  %v2267_v25 = vld [vmem:[#allocation13_spill] sm:$0xff] }
  0x52   :  { %v637_v8 = vrot.slane %v636_v55, 1  ;;  %v704_v0 = vmul.f32 %v1865_v17, %v1603_v41  ;;  %v572_v61 = vadd.f32 %v570_v43, %v550_v36  ;;  %v2265_v12 = vrot.slane %v1687_v58, %v1607_v45 }
  0x53   :  { %v723_v53 = vadd.f32 %v721_v57, %v701_v24  ;;  %v729_v35 = vrot.slane %v725_v3, 2  ;;  %v384_v10 = vrot.slane %v380_v19, 2  ;;  %v480_v54 = vmul.f32 %v1859_v48, %v1859_v48  ;;  %v1902_v3 = vld [vmem:[#allocation2 + $0x48] sm:$0xff] }
  0x54   :  { %v592_v11 = vmul.f32 %v2265_v12, %v1859_v48  ;;  %v638_v50 = vadd.f32 %v637_v8, %v636_v55  ;;  %v665_v44 = vrot.slane %v660_v1, 4  ;;  %v628_v20 = vsub.f32 %v1544_v37, %v624_v62  ;;  %v2268_v62 = vld [vmem:[#allocation14_spill] sm:$0xff] }
  0x55   :  { %v688_v4 = vmul.f32 %v1865_v17, %v1563_v49  ;;  %v733_v51 = vadd.f32 %v729_v35, %v711_v32  ;;  %v738_v42 = vrot.slane %v1459_v6, %v1607_v45  ;;  %v708_v36 = vrot.slane %v704_v0, 1 }
  0x56   :  { %v1892_v58 = vadd.f32 %v638_v50, %v1801_v39  ;;  %v1895_v24 = vadd.f32 %v665_v44, %v1808_v7  ;;  %v726_v16 = vmul.f32 %v1865_v17, %v1678_v34  ;;  %1378 = vlog2.f32 %v506_v40 }
  0x57   :  { %v594_v43 = vadd.f32 %v592_v11, %v572_v61  ;;  %v743_v18 = vmul.f32 %v738_v42, %v1714_v33  ;;  %v747_v19 = vmul.f32 %v2267_v25, %v1459_v6  ;;  %v487_v55 = vrot.slane %v480_v54, 4 }
  0x58   :  { %2266 = vst [vmem:[#allocation18_spill] sm:$0xff] %v1895_v24  ;;  %v682_v39 = vrot.slane %v1865_v17, %v1521_v22  ;;  %v698_v7 = vrot.slane %v1865_v17, %v1535_v31  ;;  %v760_v15 = vrot.slane %v1459_v6, %v1624_v46  ;;  %v1911_v32 = vmul.f32 %v2268_v62, %v628_v20  ;;  %v2272_v24 = vld [vmem:[#allocation8_spill] sm:$0xff] }
  0x59   :  { %v745_v57 = vadd.f32 %v743_v18, %v723_v53  ;;  %v751_v40 = vrot.slane %v747_v19, 3  ;;  %v769_v8 = vmul.f32 %v1846_v5, %v1459_v6  ;;  %v712_v1 = vadd.f32 %v708_v36, %v688_v4 }
  0x5a   :  { %v730_v0 = vrot.slane %v726_v16, 2  ;;  %v748_v61 = vmul.f32 %v1865_v17, %v1796_v2  ;;  %v765_v12 = vmul.f32 %v760_v15, %v1821_v14  ;;  %v610_v11 = vsub.f32 %v1902_v3, %v594_v43 }
  0x5b   :  { %v755_v35 = vadd.f32 %v751_v40, %v733_v51  ;;  %v773_v50 = vrot.slane %v769_v8, 4  ;;  %1380 = vrcp.f32 %v1459_v6  ;;  %v618_v53 = vrot.slane %v2268_v62, %v1624_v46  ;;  %v2270_v51 = vld [vmem:[#allocation5_spill] sm:$0xff] }
  0x5c   :  { %v684_v44 = vmul.f32 %v682_v39, %v1586_v9  ;;  %v700_v20 = vmul.f32 %v698_v7, %v1635_v29  ;;  %v767_v4 = vadd.f32 %v765_v12, %v745_v57  ;;  %v1925_v42 = vadd.f32 %v384_v10, %v1849_v47 }
  0x5d   :  { %v720_v36 = vrot.slane %v1865_v17, %v1594_v28  ;;  %v777_v16 = vadd.f32 %v773_v50, %v755_v35  ;;  %v852_v43 = vrot.slane %v2270_v51, %v1521_v22  ;;  %v488_v18 = vadd.f32 %v487_v55, %v480_v54 }
  0x5e   :  { %2269 = vst [vmem:[#allocation14_spill] sm:$0xff] %v1925_v42  ;;  %v734_v6 = vadd.f32 %v730_v0, %v712_v1  ;;  %v752_v19 = vrot.slane %v748_v61, 3  ;;  %v770_v15 = vmul.f32 %v1865_v17, %v1911_v32  ;;  %v1935_v39 = vmul.f32 %v1796_v2, %v1796_v2 }
  0x5f   :  { %v797_v7 = vrot.slane %v777_v16, 3  ;;  %v857_v47 = vmul.f32 %v852_v43, %v1546_v38  ;;  %v868_v10 = vrot.slane %v2270_v51, %v1535_v31  ;;  %v1940_v57 = vmul.f32 %v618_v53, %v610_v11 }
  0x60   :  { %2271 = vst [vmem:[#allocation5_spill] sm:$0xff] %v1935_v39  ;;  %v702_v40 = vadd.f32 %v700_v20, %v684_v44  ;;  %v861_v54 = vmul.f32 %v1530_v27, %v2270_v51  ;;  %v877_v55 = vmul.f32 %v1565_v52, %v2270_v51  ;;  %v1379_v8 = vpop.eup %1378  ;;  %v722_v1 = vmul.f32 %v720_v36, %v1726_v30  ;;  %v1970_v39 = vld [vmem:[#allocation3 + $0x68] sm:$0xff] }
  0x61   :  { %v742_v0 = vrot.slane %v1865_v17, %v1607_v45  ;;  %v873_v61 = vmul.f32 %v868_v10, %v1570_v56  ;;  %v890_v12 = vrot.slane %v2270_v51, %v1594_v28  ;;  %v756_v11 = vadd.f32 %v752_v19, %v734_v6 }
  0x62   :  { %v774_v35 = vrot.slane %v770_v15, 4  ;;  %v801_v50 = vsub.f32 %v1518_v21, %v797_v7  ;;  %v881_v53 = vrot.slane %v877_v55, 1  ;;  %v489_v44 = vrot.slane %v488_v18, 2 }
  0x63   :  { %v875_v20 = vadd.f32 %v873_v61, %v857_v47  ;;  %v895_v16 = vmul.f32 %v890_v12, %v1630_v26  ;;  %v899_v36 = vmul.f32 %v1633_v13, %v2270_v51  ;;  %v1959_v10 = vmul.f32 %v1940_v57, %v1940_v57  ;;  %v2274_v12 = vld [vmem:[#allocation11_spill] sm:$0xff] }
  0x64   :  { %v783_v42 = vsub.f32 %v2272_v24, %v767_v4  ;;  %v885_v6 = vadd.f32 %v881_v53, %v861_v54  ;;  %v724_v15 = vadd.f32 %v722_v1, %v702_v40  ;;  %v744_v7 = vmul.f32 %v742_v0, %v1859_v48 }
  0x65   :  { %v1962_v19 = vpop.eup %1380  ;;  %v897_v47 = vadd.f32 %v895_v16, %v875_v20  ;;  %v903_v55 = vrot.slane %v899_v36, 2  ;;  %v778_v61 = vadd.f32 %v774_v35, %v756_v11  ;;  %v912_v24 = vrot.slane %v2270_v51, %v1607_v45 }
  0x66   :  { %2273 = vst [vmem:[#allocation8_spill] sm:$0xff] %v1962_v19  ;;  %v788_v23 = vrot.slane %v1962_v19, %v2274_v12  ;;  %v1968_v43 = vmul.f32 %v1962_v19, %v801_v50  ;;  %v1974_v4 = vadd.f32 %v489_v44, %v488_v18  ;;  %v1976_v54 = vmul.f32 0.6931472, %v1379_v8 }
  0x67   :  { %1382 = vrcp.f32 %v1865_v17  ;;  %v878_v40 = vmul.f32 %v1970_v39, %v1603_v41  ;;  %v764_v1 = vrot.slane %v1865_v17, %v1624_v46  ;;  %v907_v35 = vadd.f32 %v903_v55, %v885_v6 }
  0x68   :  { %v1983_v0 = vmul.f32 %v788_v23, %v783_v42  ;;  %v821_v11 = vmul.f32 %v1968_v43, %v1968_v43  ;;  %v639_v50 = vrot.slane %v1959_v10, 4  ;;  %v746_v18 = vadd.f32 %v744_v7, %v724_v15 }
  0x69   :  { %v856_v8 = vrot.slane %v1970_v39, %v1521_v22  ;;  %v872_v53 = vrot.slane %v1970_v39, %v1535_v31  ;;  %v798_v44 = vrot.slane %v778_v61, 3  ;;  %v917_v23 = vmul.f32 %v912_v24, %v1714_v33 }
  0x6a   :  { %v805_v20 = vmul.f32 %v1983_v0, %v1983_v0  ;;  %v825_v17 = vrot.slane %v821_v11, 5  ;;  %v862_v42 = vmul.f32 %v1970_v39, %v1563_v49  ;;  %v882_v16 = vrot.slane %v878_v40, 1 }
  0x6b   :  { %v900_v36 = vmul.f32 %v1970_v39, %v1678_v34  ;;  %v921_v6 = vmul.f32 %v2267_v25, %v2270_v51  ;;  %v766_v15 = vmul.f32 %v764_v1, %v1940_v57  ;;  %v919_v61 = vadd.f32 %v917_v23, %v897_v47 }
  0x6c   :  { %v807_v7 = vrot.slane %v805_v20, 4  ;;  %v2003_v55 = vadd.f32 %v825_v17, %v1874_v63  ;;  %v858_v11 = vmul.f32 %v856_v8, %v1586_v9  ;;  %v874_v24 = vmul.f32 %v872_v53, %v1635_v29 }
  0x6d   :  { %v894_v40 = vrot.slane %v1970_v39, %v1594_v28  ;;  %v925_v59 = vrot.slane %v921_v6, 3  ;;  %v802_v60 = vsub.f32 %v1544_v37, %v798_v44  ;;  %v934_v25 = vrot.slane %v2270_v51, %v1624_v46 }
  0x6e   :  { %2275 = vst [vmem:[#allocation11_spill] sm:$0xff] %v2003_v55  ;;  %v808_v33 = vadd.f32 %v807_v7, %v805_v20  ;;  %v943_v1 = vmul.f32 %v1846_v5, %v2270_v51  ;;  %v886_v63 = vadd.f32 %v882_v16, %v862_v42  ;;  %v904_v17 = vrot.slane %v900_v36, 2  ;;  %v2024_v16 = vld [vmem:[#allocation2 + $0x58] sm:$0xff] }
  0x6f   :  { %v922_v47 = vmul.f32 %v1970_v39, %v1796_v2  ;;  %v929_v8 = vadd.f32 %v925_v59, %v907_v35  ;;  %v768_v53 = vadd.f32 %v766_v15, %v746_v18  ;;  %v939_v55 = vmul.f32 %v934_v25, %v1821_v14 }
  0x70   :  { %v809_v23 = vrot.slane %v808_v33, 2  ;;  %v947_v6 = vrot.slane %v943_v1, 4  ;;  %v876_v44 = vadd.f32 %v874_v24, %v858_v11  ;;  %v896_v20 = vmul.f32 %v894_v40, %v1726_v30 }
  0x71   :  { %v2017_v19 = vpop.eup %1382  ;;  %v916_v7 = vrot.slane %v1970_v39, %v1607_v45  ;;  %v956_v42 = vrot.slane %v2270_v51, %v2274_v12  ;;  %v941_v18 = vadd.f32 %v939_v55, %v919_v61  ;;  %v908_v36 = vadd.f32 %v904_v17, %v886_v63 }
  0x72   :  { %v2027_v59 = vmul.f32 %v2017_v19, %v802_v60  ;;  %v810_v35 = vadd.f32 %v809_v23, %v808_v33  ;;  %v951_v25 = vadd.f32 %v947_v6, %v929_v8  ;;  %v926_v15 = vrot.slane %v922_v47, 3 }
  0x73   :  { %v944_v11 = vmul.f32 %v1970_v39, %v1911_v32  ;;  %v961_v24 = vmul.f32 %v956_v42, %v1983_v0  ;;  %v2033_v40 = vadd.f32 %v639_v50, %v1959_v10  ;;  %v658_v1 = vmul.f32 %v2268_v62, %v1902_v3  ;;  %v2062_v42 = vld [vmem:[#allocation3 + $0x78] sm:$0xff] }
  0x74   :  { %v811_v37 = vrot.slane %v810_v35, 1  ;;  %v965_v60 = vmul.f32 %v1968_v43, %v2270_v51  ;;  %v784_v33 = vsub.f32 %v2024_v16, %v768_v53  ;;  %v792_v55 = vrot.slane %v2017_v19, %v2274_v12 }
  0x75   :  { %v898_v61 = vadd.f32 %v896_v20, %v876_v44  ;;  %v2042_v63 = vadd.f32 %v961_v24, %v941_v18  ;;  %v918_v47 = vmul.f32 %v916_v7, %v1859_v48  ;;  %v938_v10 = vrot.slane %v1970_v39, %v1624_v46 }
  0x76   :  { %v812_v17 = vadd.f32 %v811_v37, %v810_v35  ;;  %v969_v50 = vrot.slane %v965_v60, 5  ;;  %v930_v3 = vadd.f32 %v926_v15, %v908_v36  ;;  %v948_v62 = vrot.slane %v944_v11, 4  ;;  %v2276_v36 = vld [vmem:[#allocation6_spill] sm:$0xff] }
  0x77   :  { %v966_v8 = vmul.f32 %v1970_v39, %v2027_v59  ;;  %1384 = vrcp.f32 %v2270_v51  ;;  %v491_v53 = vrot.slane %v1974_v4, 1  ;;  %v514_v23 = vrot.slane %v1976_v54, 3 }
  0x78   :  { %v2053_v6 = vadd.f32 %v812_v17, %v1892_v58  ;;  %v973_v37 = vadd.f32 %v969_v50, %v951_v25  ;;  %v641_v44 = vrot.slane %v2033_v40, 2  ;;  %v2058_v20 = vmul.f32 %v1911_v32, %v1911_v32 }
  0x79   :  { %1386 = vlog2.f32 %v658_v1  ;;  %v2060_v7 = vmul.f32 %v792_v55, %v784_v33  ;;  %v920_v51 = vadd.f32 %v918_v47, %v898_v61  ;;  %v940_v35 = vmul.f32 %v938_v10, %v1940_v57 }
  0x7a   :  { %v993_v18 = vrot.slane %v973_v37, 2  ;;  %v1048_v58 = vrot.slane %v2276_v36, %v1521_v22  ;;  %v952_v15 = vadd.f32 %v948_v62, %v930_v3  ;;  %v960_v25 = vrot.slane %v1970_v39, %v2274_v12 }
  0x7b   :  { %v970_v11 = vrot.slane %v966_v8, 5  ;;  %v1064_v24 = vrot.slane %v2276_v36, %v1535_v31  ;;  %1388 = vrcp.f32 %v1970_v39  ;;  %v1052_v1 = vrot.slane %v2062_v42, %v1521_v22  ;;  %v2277_v39 = vld [vmem:[#allocation7_spill] sm:$0xff] }
  0x7c   :  { %v1053_v60 = vmul.f32 %v1048_v58, %v1546_v38  ;;  %v1068_v33 = vrot.slane %v2062_v42, %v1535_v31  ;;  %v1057_v55 = vmul.f32 %v1530_v27, %v2276_v36  ;;  %v1073_v17 = vmul.f32 %v1565_v52, %v2276_v36  ;;  %v2278_v27 = vld [vmem:[#allocation9_spill] sm:$0xff] }
  0x7d   :  { %v1069_v61 = vmul.f32 %v1064_v24, %v1570_v56  ;;  %v1074_v47 = vmul.f32 %v2062_v42, %v1603_v41  ;;  %v2085_v10 = vsub.s32 6, %v2277_v39  ;;  %v997_v22 = vsub.f32 %v1518_v21, %v993_v18 }
  0x7e   :  { %v1086_v38 = vrot.slane %v2276_v36, %v1594_v28  ;;  %v1095_v31 = vmul.f32 %v1633_v13, %v2276_v36  ;;  %v979_v56 = vsub.f32 %v2278_v27, %v2042_v63  ;;  %v1058_v52 = vmul.f32 %v2062_v42, %v1563_v49  ;;  %v2110_v36 = vld [vmem:[#allocation3 + $0x70] sm:$0xff] }
  0x7f   :  { %v1071_v50 = vadd.f32 %v1069_v61, %v1053_v60  ;;  %v1077_v3 = vrot.slane %v1073_v17, 1  ;;  %v1054_v41 = vmul.f32 %v1052_v1, %v1586_v9  ;;  %v1070_v62 = vmul.f32 %v1068_v33, %v1635_v29  ;;  %v2279_v33 = vld [vmem:[#allocation8_spill] sm:$0xff] }
  0x80   :  { %v1091_v8 = vmul.f32 %v1086_v38, %v1630_v26  ;;  %v1099_v37 = vrot.slane %v1095_v31, 2  ;;  %v1078_v58 = vrot.slane %v1074_v47, 1  ;;  %v1090_v13 = vrot.slane %v2062_v42, %v1594_v28  ;;  %v1407_v28 = vld [vmem:[#allocation2 + $0x50] sm:$0xff] }
  0x81   :  { %v2099_v18 = vpop.eup %1384  ;;  %v1081_v24 = vadd.f32 %v1077_v3, %v1057_v55  ;;  %v1096_v63 = vmul.f32 %v2062_v42, %v1678_v34  ;;  %v1108_v26 = vrot.slane %v2110_v36, %v1607_v45  ;;  %v2115_v60 = vadd.f32 %v641_v44, %v2033_v40 }
  0x82   :  { %v984_v49 = vrot.slane %v2099_v18, %v2085_v10  ;;  %v2108_v9 = vmul.f32 %v2099_v18, %v997_v22  ;;  %v1093_v29 = vadd.f32 %v1091_v8, %v1071_v50  ;;  %v831_v55 = vmul.f32 %v1407_v28, %v2279_v33 }
  0x83   :  { %v1387_v1 = vpop.eup %1386  ;;  %v832_v34 = vmul.f32 %v2017_v19, %v2024_v16  ;;  %v942_v61 = vadd.f32 %v940_v35, %v920_v51  ;;  %v962_v17 = vmul.f32 %v960_v25, %v2060_v7  ;;  %v1103_v38 = vadd.f32 %v1099_v37, %v1081_v24  ;;  %v2280_v51 = vld [vmem:[#allocation12_spill] sm:$0xff] }
  0x84   :  { %v2121_v47 = vmul.f32 %v984_v49, %v979_v56  ;;  %v1017_v22 = vmul.f32 %v2108_v9, %v2108_v9  ;;  %v974_v31 = vadd.f32 %v970_v11, %v952_v15  ;;  %v1072_v27 = vadd.f32 %v1070_v62, %v1054_v41  ;;  %v2281_v56 = vld [vmem:[#allocation13_spill] sm:$0xff]  ;;  %v2282_v41 = vld [vmem:[#allocation11_spill] sm:$0xff] }
  0x85   :  { %v1082_v50 = vadd.f32 %v1078_v58, %v1058_v52  ;;  %v1092_v40 = vmul.f32 %v1090_v13, %v1726_v30  ;;  %v2126_v44 = vpop.eup %1388  ;;  %v1100_v16 = vrot.slane %v1096_v63, 2  ;;  %v1113_v35 = vmul.f32 %v1108_v26, %v2280_v51  ;;  %v848_v58 = vld [vmem:[#allocation2 + $0x68] sm:$0xff] }
  0x86   :  { %v1001_v3 = vmul.f32 %v2121_v47, %v2121_v47  ;;  %v1021_v19 = vrot.slane %v1017_v22, 6  ;;  %1390 = vlog2.f32 %v831_v55  ;;  %v1112_v25 = vrot.slane %v2062_v42, %v1607_v45 }
  0x87   :  { %v1117_v15 = vmul.f32 %v2110_v36, %v2281_v56  ;;  %v1118_v11 = vmul.f32 %v2062_v42, %v1796_v2  ;;  %v964_v30 = vadd.f32 %v962_v17, %v942_v61  ;;  %v1115_v8 = vadd.f32 %v1113_v35, %v1093_v29 }
  0x88   :  { %v1003_v52 = vrot.slane %v1001_v3, 4  ;;  %v2138_v62 = vadd.f32 %v1021_v19, %v2282_v41  ;;  %v806_v37 = vmul.f32 %v2060_v7, %v2060_v7  ;;  %v994_v24 = vrot.slane %v974_v31, 2 }
  0x89   :  { %v1094_v13 = vadd.f32 %v1092_v40, %v1072_v27  ;;  %v1121_v63 = vrot.slane %v1117_v15, 3  ;;  %v1104_v49 = vadd.f32 %v1100_v16, %v1082_v50  ;;  %v1122_v26 = vrot.slane %v1118_v11, 3  ;;  %v2283_v50 = vld [vmem:[#allocation10_spill] sm:$0xff] }
  0x8a   :  { %v1004_v45 = vadd.f32 %v1003_v52, %v1001_v3  ;;  %v1130_v28 = vrot.slane %v2110_v36, %v1624_v46  ;;  %v1114_v2 = vmul.f32 %v1112_v25, %v1859_v48  ;;  %v1134_v55 = vrot.slane %v2062_v42, %v1624_v46 }
  0x8b   :  { %v1125_v33 = vadd.f32 %v1121_v63, %v1103_v38  ;;  %v1139_v29 = vmul.f32 %v2110_v36, %v1846_v5  ;;  %v980_v61 = vsub.f32 %v848_v58, %v964_v30  ;;  %v1140_v31 = vmul.f32 %v2062_v42, %v1911_v32 }
  0x8c   :  { %v1005_v17 = vrot.slane %v1004_v45, 2  ;;  %v1135_v22 = vmul.f32 %v1130_v28, %v1821_v14  ;;  %v988_v27 = vrot.slane %v2126_v44, %v2085_v10  ;;  %v998_v40 = vsub.f32 %v2283_v50, %v994_v24 }
  0x8d   :  { %v1143_v48 = vrot.slane %v1139_v29, 4  ;;  %v1152_v38 = vrot.slane %v2110_v36, %v2274_v12  ;;  %v1126_v3 = vadd.f32 %v1122_v26, %v1104_v49  ;;  %v1144_v5 = vrot.slane %v1140_v31, 4  ;;  %v1408_v26 = vld [vmem:[#allocation2 + $0x60] sm:$0xff] }
  0x8e   :  { %v1006_v46 = vadd.f32 %v1005_v17, %v1004_v45  ;;  %v1137_v19 = vadd.f32 %v1135_v22, %v1115_v8  ;;  %v1116_v16 = vadd.f32 %v1114_v2, %v1094_v13  ;;  %v1136_v51 = vmul.f32 %v1134_v55, %v1940_v57 }
  0x8f   :  { %v1147_v14 = vadd.f32 %v1143_v48, %v1125_v33  ;;  %v1157_v35 = vmul.f32 %v1152_v38, %v1983_v0  ;;  %v2159_v32 = vmul.f32 0.6931472, %v1387_v1  ;;  %1392 = vlog2.f32 %v832_v34 }
  0x90   :  { %v1007_v25 = vrot.slane %v1006_v46, 1  ;;  %v1156_v56 = vrot.slane %v2062_v42, %v2274_v12  ;;  %v2163_v15 = vpop.eup %1390  ;;  %v813_v11 = vrot.slane %v806_v37, 4  ;;  %v990_v30 = vmul.f32 %v988_v27, %v980_v61  ;;  %v2284_v27 = vld [vmem:[#allocation15_spill] sm:$0xff] }
  0x91   :  { %v1159_v52 = vadd.f32 %v1157_v35, %v1137_v19  ;;  %v1161_v41 = vmul.f32 %v2110_v36, %v1968_v43  ;;  %v2168_v57 = vmul.f32 %v2126_v44, %v998_v40  ;;  %v1148_v0 = vadd.f32 %v1144_v5, %v1126_v3  ;;  %v2285_v40 = vld [vmem:[#allocation17_spill] sm:$0xff]  ;;  %v2289_v3 = vld [vmem:[#allocation14_spill] sm:$0xff] }
  0x92   :  { %v1008_v8 = vadd.f32 %v1007_v25, %v1006_v46  ;;  %v1162_v1 = vmul.f32 %v2062_v42, %v2027_v59  ;;  %v1002_v34 = vmul.f32 %v990_v30, %v990_v30  ;;  %v1138_v24 = vadd.f32 %v1136_v51, %v1116_v16 }
  0x93   :  { %v1165_v13 = vrot.slane %v1161_v41, 5  ;;  %v1174_v12 = vrot.slane %v2110_v36, %v2085_v10  ;;  %v1158_v45 = vmul.f32 %v1156_v56, %v2060_v7  ;;  %v1178_v49 = vrot.slane %v2062_v42, %v2085_v10  ;;  %v1044_v56 = vld [vmem:[#allocation2 + $0x78] sm:$0xff] }
  0x94   :  { %v2175_v63 = vadd.f32 %v1008_v8, %v2053_v6  ;;  %v1166_v43 = vrot.slane %v1162_v1, 5  ;;  %v1027_v28 = vmul.f32 %v1408_v26, %v2099_v18  ;;  %v1183_v55 = vmul.f32 %v2110_v36, %v2108_v9 }
  0x95   :  { %v1169_v2 = vadd.f32 %v1165_v13, %v1147_v14  ;;  %v1179_v33 = vmul.f32 %v1174_v12, %v2121_v47  ;;  %v1028_v29 = vmul.f32 %v2126_v44, %v848_v58  ;;  %v1184_v6 = vmul.f32 %v2062_v42, %v2168_v57 }
  0x96   :  { %v1170_v61 = vadd.f32 %v1166_v43, %v1148_v0  ;;  %1394 = vrcp.f32 %v2110_v36  ;;  %v814_v7 = vadd.f32 %v813_v11, %v806_v37  ;;  %v1187_v10 = vrot.slane %v1183_v55, 6  ;;  %v2286_v36 = vld [vmem:[#allocation16_spill] sm:$0xff]  ;;  %v2287_v37 = vld [vmem:[#allocation5_spill] sm:$0xff] }
  0x97   :  { %v1181_v17 = vadd.f32 %v1179_v33, %v1159_v52  ;;  %1396 = vrcp.f32 %v2062_v42  ;;  %v1009_v18 = vrot.slane %v1002_v34, 4  ;;  %v1160_v22 = vadd.f32 %v1158_v45, %v1138_v24 }
  0x98   :  { %v1180_v31 = vmul.f32 %v1178_v49, %v990_v30  ;;  %v1188_v47 = vrot.slane %v1184_v6, 6  ;;  %v364_v9 = vadd.f32 %v2285_v40, %v2284_v27  ;;  %1398 = vlog2.f32 %v1027_v28 }
  0x99   :  { %v1191_v44 = vadd.f32 %v1187_v10, %v1169_v2  ;;  %v1393_v58 = vpop.eup %1392  ;;  %v492_v48 = vadd.f32 %v491_v53, %v1974_v4  ;;  %v2288_v38 = vrot.slane %v2287_v37, 3  ;;  %1400 = vlog2.f32 %v1028_v29  ;;  %v1043_v4 = vld [vmem:[#allocation2 + $0x70] sm:$0xff] }
  0x9a   :  { %v1192_v42 = vadd.f32 %v1188_v47, %v1170_v61  ;;  %v518_v19 = vadd.f32 %v514_v23, %v2289_v3  ;;  %v643_v5 = vrot.slane %v2115_v60, 1  ;;  %v652_v16 = vrot.slane %v2058_v20, 4 }
  0x9b   :  { %v504_v46 = vadd.f32 %v2288_v38, %v2286_v36  ;;  %v1211_v51 = vrot.slane %v1191_v44, 1  ;;  %v666_v14 = vrot.slane %v2159_v32, 4  ;;  %v815_v35 = vrot.slane %v814_v7, 2 }
  0x9c   :  { %v1010_v25 = vadd.f32 %v1009_v18, %v1002_v34  ;;  %v1182_v53 = vadd.f32 %v1180_v31, %v1160_v22  ;;  %v1201_v11 = vsub.s32 7, %v2277_v39  ;;  %v1212_v52 = vrot.slane %v1192_v42, 1  ;;  %v2290_v42 = vld [vmem:[#allocation18_spill] sm:$0xff] }
  0x9d   :  { %v1215_v30 = vsub.f32 %v1518_v21, %v1211_v51  ;;  %v494_v41 = vadd.f32 %v492_v48, %v364_v9  ;;  %v644_v54 = vadd.f32 %v643_v5, %v2115_v60  ;;  %v656_v23 = vadd.f32 %v652_v16, %v504_v46 }
  0x9e   :  { %v1197_v8 = vsub.f32 %v1043_v4, %v1181_v17  ;;  %v670_v20 = vadd.f32 %v666_v14, %v518_v19  ;;  %v816_v1 = vadd.f32 %v815_v35, %v814_v7  ;;  %v1011_v24 = vrot.slane %v1010_v25, 2 }
  0x9f   :  { %v1198_v32 = vsub.f32 %v1044_v56, %v1182_v53  ;;  %v822_v34 = vmul.f32 %v2027_v59, %v2027_v59  ;;  %v834_v21 = vmul.f32 0.6931472, %v2163_v15  ;;  %v1216_v26 = vsub.f32 %v2283_v50, %v1212_v52 }
  0xa0   :  { %v1395_v0 = vpop.eup %1394  ;;  %v836_v2 = vmul.f32 0.6931472, %v1393_v58  ;;  %v817_v61 = vrot.slane %v816_v1, 1  ;;  %v1012_v6 = vadd.f32 %v1011_v24, %v1010_v25  ;;  %v1018_v17 = vmul.f32 %v2168_v57, %v2168_v57 }
  0xa1   :  { %v1397_v13 = vpop.eup %1396  ;;  %v1202_v12 = vrot.slane %v1395_v0, %v1201_v11  ;;  %v1217_v45 = vmul.f32 %v1395_v0, %v1215_v30  ;;  %v1245_v43 = vmul.f32 %v1395_v0, %v1043_v4  ;;  %v826_v59 = vrot.slane %v822_v34, 5 }
  0xa2   :  { %v1206_v49 = vrot.slane %v1397_v13, %v1201_v11  ;;  %v1246_v60 = vmul.f32 %v1397_v13, %v1044_v56  ;;  %v1399_v28 = vpop.eup %1398  ;;  %v839_v18 = vrot.slane %v834_v21, 5  ;;  %v1218_v50 = vmul.f32 %v1397_v13, %v1216_v26 }
  0xa3   :  { %v1207_v33 = vmul.f32 %v1202_v12, %v1197_v8  ;;  %v1235_v55 = vmul.f32 %v1217_v45, %v1217_v45  ;;  %1402 = vlog2.f32 %v1245_v43  ;;  %v1401_v29 = vpop.eup %1400  ;;  %v1030_v22 = vmul.f32 0.6931472, %v1399_v28 }
  0xa4   :  { %v1208_v7 = vmul.f32 %v1206_v49, %v1198_v32  ;;  %1404 = vlog2.f32 %v1246_v60  ;;  %v840_v47 = vrot.slane %v836_v2, 5  ;;  %v1032_v27 = vmul.f32 0.6931472, %v1401_v29 }
  0xa5   :  { %v1219_v10 = vmul.f32 %v1207_v33, %v1207_v33  ;;  %v1239_v15 = vrot.slane %v1235_v55, 7  ;;  %v646_v44 = vadd.f32 %v644_v54, %v494_v41  ;;  %v818_v58 = vadd.f32 %v817_v61, %v816_v1 }
  0xa6   :  { %v1220_v31 = vmul.f32 %v1208_v7, %v1208_v7  ;;  %v1013_v48 = vrot.slane %v1012_v6, 1  ;;  %v830_v37 = vadd.f32 %v826_v59, %v656_v23  ;;  %v1022_v38 = vrot.slane %v1018_v17, 6 }
  0xa7   :  { %v1221_v40 = vrot.slane %v1219_v10, 4  ;;  %v1243_v9 = vadd.f32 %v1239_v15, %v2138_v62  ;;  %v843_v57 = vadd.f32 %v839_v18, %v2290_v42  ;;  %v1035_v3 = vrot.slane %v1030_v22, 6 }
  0xa8   :  { %v1227_v36 = vrot.slane %v1220_v31, 4  ;;  %v1236_v5 = vmul.f32 %v1218_v50, %v1218_v50  ;;  %v844_v16 = vadd.f32 %v840_v47, %v670_v20  ;;  %v1036_v51 = vrot.slane %v1032_v27, 6 }
  0xa9   :  { %v1222_v46 = vadd.f32 %v1221_v40, %v1219_v10  ;;  %v820_v35 = vadd.f32 %v818_v58, %v646_v44  ;;  %v1014_v25 = vadd.f32 %v1013_v48, %v1012_v6  ;;  %v1026_v62 = vadd.f32 %v1022_v38, %v830_v37 }
  0xaa   :  { %v1228_v19 = vadd.f32 %v1227_v36, %v1220_v31  ;;  %v1039_v30 = vadd.f32 %v1035_v3, %v843_v57  ;;  %v1240_v41 = vrot.slane %v1236_v5, 7  ;;  %v1040_v23 = vadd.f32 %v1036_v51, %v844_v16 }
  0xab   :  { %v1223_v14 = vrot.slane %v1222_v46, 2  ;;  %v1016_v1 = vadd.f32 %v1014_v25, %v820_v35  ;;  %v1409_v60 = vmov 1966171168  }
  0xac   :  { %v1229_v4 = vrot.slane %v1228_v19, 2  ;;  %v1244_v12 = vadd.f32 %v1240_v41, %v1026_v62  ;;  %v1273_v28 = vunpack.c.l.s4 %v1409_v60 }
  0xad   :  { %v1403_v53 = vpop.eup %1402  ;;  %v1224_v56 = vadd.f32 %v1223_v14, %v1222_v46 }
  0xae   :  { %v1405_v11 = vpop.eup %1404  ;;  %v1230_v52 = vadd.f32 %v1229_v4, %v1228_v19  ;;  %v1248_v54 = vmul.f32 0.6931472, %v1403_v53  ;;  %v1274_v6 = vunpack.c.0.s8 %v1273_v28 }
  0xaf   :  { %v1225_v8 = vrot.slane %v1224_v56, 1  ;;  %v1250_v0 = vmul.f32 0.6931472, %v1405_v11 }
  0xb0   :  { %v1231_v24 = vrot.slane %v1230_v52, 1  ;;  %v1253_v32 = vrot.slane %v1248_v54, 7  ;;  %v1277_v15 = vsub.s32 %v1274_v6, %v2277_v39 }
  0xb1   :  { %v1226_v20 = vadd.f32 %v1225_v8, %v1224_v56  ;;  %v1254_v13 = vrot.slane %v1250_v0, 7 }
  0xb2   :  { %v1232_v34 = vadd.f32 %v1231_v24, %v1230_v52  ;;  %v1257_v45 = vadd.f32 %v1253_v32, %v1039_v30 }
  0xb3   :  { %v1233_v43 = vadd.f32 %v1226_v20, %v2175_v63  ;;  %v1258_v21 = vadd.f32 %v1254_v13, %v1040_v23  ;;  %v2291_v63 = vlaneseq }
  0xb4   :  { %v1234_v49 = vadd.f32 %v1232_v34, %v1016_v1  ;;  %v1261_v26 = vmul.f32 2.0, %v1257_v45 }
  0xb5   :  { %v1259_v2 = vadd.f32 %v1243_v9, %v1233_v43  ;;  %v1262_v33 = vmul.f32 2.0, %v1258_v21  ;;  %vm1289_vm0 = vcmp.lt.s32.totalorder %v2291_v63, 256 }
  0xb6   :  { %v1260_v55 = vadd.f32 %v1244_v12, %v1234_v49 }
  0xb7   :  { %v1263_v29 = vsub.f32 %v1259_v2, %v1261_v26 }
  0xb8   :  { %v1264_v61 = vsub.f32 %v1260_v55, %v1262_v33 }
  0xb9   :  { %v1339_v7 = vadd.f32 -8.0, %v1263_v29 }
  0xba   :  { %v1340_v59 = vadd.f32 -8.0, %v1264_v61 }
  0xbb   :  { %v1267_v17 = vmul.f32 0.5, %v1339_v7 }
  0xbc   :  { %v1268_v10 = vmul.f32 0.5, %v1340_v59 }
  0xbe   :  { %v1271_v18 = vcombine.low %v1267_v17, %v1268_v10 }
  0xc0   :  { %v1278_v22 = vrot.slane %v1271_v18, %v1277_v15 }
  0xc2   :  { %v1285_v50 = vrot.slane %v1278_v22, %v1277_v15 }
  0xc4   :  { %1291 = vst.msk [vmem:[#allocation4] sm:$0x3] %vm1289_vm0, %v1285_v50 }
  0xcb   :  { %v1309_v31 = vld [vmem:[#allocation4] sm:$0x1] }
  0xcc   :  { %1310 = vst [vmem:[%s2224_s4] sm:$0x1] %v1309_v31 }

</bundles_post_ra>
